<compile_context>
chip_gen: v5e
topology: v5e:2x2
jax: 0.10.0
libtpu: 0.0.40
codegen_flags: <defaults>
</compile_context>

<pallas_src>
import functools

import jax
import jax.numpy as jnp
from jax.experimental import pallas as pl
from jax.experimental.pallas import tpu as pltpu


def _gelu(t):
    # TODO(synk): PyTorch F.gelu defaults to the exact erf formulation; the tanh
    # approximation is used here for portable Mosaic lowering (max dev ~1e-3).  Both
    # the kernel and the reference below use this same function.
    c = 0.7978845608028654  # sqrt(2/pi)
    return 0.5 * t * (1.0 + jnp.tanh(c * (t + 0.044715 * t * t * t)))


def bilinear_matrix_align_corners(src, dst):
    """(dst, src) interpolation matrix matching torch bilinear align_corners=True."""
    if src == 1:
        return jnp.ones((dst, 1), jnp.float32)
    pos = jnp.arange(dst, dtype=jnp.float32) * (src - 1) / (dst - 1)
    lo = jnp.clip(jnp.floor(pos).astype(jnp.int32), 0, src - 2)
    frac = pos - lo.astype(jnp.float32)
    rows = jnp.arange(dst)
    m = jnp.zeros((dst, src), jnp.float32)
    m = m.at[rows, lo].add(1.0 - frac)
    m = m.at[rows, lo + 1].add(frac)
    return m


def _up_kernel(x_ref, skip_ref, uwt_ref, uh_ref, cmask_ref,
               wm1_ref, g1_ref, b1_ref,
               wm2_ref, g2_ref, b2_ref,
               wm3_ref, g3_ref, b3_ref,
               wm4_ref, g4_ref, b4_ref,
               out_ref, *, h, w, h2, w2):
    hw = h2 * w2
    bn = x_ref.shape[0]            # samples handled in this grid step (static)
    cx = x_ref.shape[1] // h

    # Sample-independent loads, hoisted out of the per-sample loop.
    cm = cmask_ref[...]
    mask_dxm = cm[0:1, :]          # 0 at x == w2-1: pre-masks the SOURCE of all dx=-1 taps
    mask_dxp = cm[1:2, :]          # 0 at x == 0   : pre-masks the SOURCE of all dx=+1 taps
    uwt = uwt_ref[...]                                        # (w, w2)   f32
    uh_b = jnp.broadcast_to(uh_ref[...], (cx, h2, h))         # (cx, h2, h) f32

    def shift_flat(t, off):
        # out[:, p] = t[:, p + off], zero-padded at the flat ends.  The flat-end zero
        # padding is exactly the dy=+-1 top/bottom-row boundary condition; dx=+-1
        # cross-row leakage is handled by the pre-masked source copies above.
        if off == 0:
            return t
        pad = jnp.zeros((t.shape[0], abs(off)), t.dtype)
        if off > 0:
            return jnp.concatenate([t[:, off:], pad], axis=1)
        return jnp.concatenate([pad, t[:, :hw + off]], axis=1)

    def conv3x3(act_f32, wm_ref):
        # act_f32: (ci, hw) f32.  wm_ref: (9, co, ci), tap order k = (dy+1)*3 + (dx+1).
        # 9 per-tap matmuls accumulated in f32: no (9*ci, hw) patch matrix, no sublane
        # concat.  The activation is cast to the MXU feed dtype once; only two masked
        # copies are materialized (one per non-zero dx direction).
        co = wm_ref.shape[1]
        act = act_f32.astype(wm_ref.dtype)
        srcs = {-1: act * mask_dxm, 0: act, 1: act * mask_dxp}
        acc = jnp.zeros((co, hw), jnp.float32)
        k = 0
        for dy in (-1, 0, 1):
            for dx in (-1, 0, 1):
                tap = shift_flat(srcs[dx], dy * w2 + dx)
                acc = acc + jnp.dot(wm_ref[k], tap,
                                    preferred_element_type=jnp.float32)
                k += 1
        return acc

    def group_norm(t, g_ref, b_ref, eps=1e-5):
        # GroupNorm(num_groups=1): single-pass statistics over the whole (C, HW)
        # sample (sum + sum-of-squares), all in f32; normalize folded into one
        # scale/shift multiply-add.
        inv_n = 1.0 / (t.shape[0] * t.shape[1])
        mean = jnp.sum(t) * inv_n
        var = jnp.sum(t * t) * inv_n - mean * mean
        inv = jax.lax.rsqrt(jnp.maximum(var, 0.0) + eps)
        scale = g_ref[...] * inv                  # (C, 1)
        shift = b_ref[...] - mean * scale         # (C, 1)
        return t * scale + shift

    for b in range(bn):            # static sub-batch unroll (amortizes step overhead)
        # ---- separable bilinear x2 upsample (align_corners=True) ----
        # x_ref[b]: (cx*h, w), row index c*h + y (host pre-folded).  W-direction
        # matmul, then a channel-batched H-direction matmul emitting (cx, h2, w2)
        # directly (no explicit transposes; one final sublane->lane merge reshape).
        a = jnp.dot(x_ref[b], uwt, preferred_element_type=jnp.float32)    # (cx*h, w2)
        a3 = a.reshape(cx, h, w2)
        up3 = jax.lax.dot_general(uh_b, a3, (((2,), (1,)), ((0,), (0,))),
                                  preferred_element_type=jnp.float32)     # (cx, h2, w2)
        up = up3.reshape(cx, hw)                                          # (cx, hw)

        # ---- torch.cat([skip_x, x_up], dim=1): channel concat (axis 0 here) ----
        z = jnp.concatenate([skip_ref[b], up], axis=0)                    # (cin, hw) f32

        # ---- DoubleConv(Cin, Cin, residual=True) ----
        t = conv3x3(z, wm1_ref)
        t = _gelu(group_norm(t, g1_ref, b1_ref))
        t = conv3x3(t, wm2_ref)
        t = group_norm(t, g2_ref, b2_ref)
        y = _gelu(z + t)                                                  # residual in f32

        # ---- DoubleConv(Cin, Cout, mid=Cin//2) ----
        t = conv3x3(y, wm3_ref)
        t = _gelu(group_norm(t, g3_ref, b3_ref))
        t = conv3x3(t, wm4_ref)
        out_ref[b] = group_norm(t, g4_ref, b4_ref)                        # (cout, hw)


def up_forward(x_nchw, skip_nchw, params, *, mxu_dtype=jnp.bfloat16, block_n=1):
    """Fused Up-block forward.

    mxu_dtype: dtype fed to the conv matmuls on the MXU (bf16 default, best on
    v6e/v7x; pass jnp.float32 for PyTorch-style validation math).  block_n: samples
    processed per grid step (keep n/block_n >= 2 so megacore still shards)."""
    n, cx, h, w = x_nchw.shape
    _, cs, h2, w2 = skip_nchw.shape
    assert (h2, w2) == (2 * h, 2 * w)
    assert n % block_n == 0
    hw2 = h2 * w2

    # Channels-first activations.  x is pre-folded to (cx*h, w) rows (contiguous
    # reshape) so the kernel's first upsample matmul needs no in-kernel fold.
    x = x_nchw.reshape(n, cx * h, w).astype(jnp.float32)
    skip = skip_nchw.reshape(n, cs, hw2).astype(jnp.float32)

    # Separable upsample operands (tiny, f32).
    uwt = bilinear_matrix_align_corners(w, w2).T          # (W, W2)
    uh = bilinear_matrix_align_corners(h, h2)             # (H2, H)

    # Column-validity keep-masks, precomputed on the host (no in-kernel iota/reshape).
    # Row 0: zero at x == w2-1 (source mask for dx=-1 taps); row 1: zero at x == 0
    # (source mask for dx=+1 taps).  Values are exact 0/1 even in bf16.
    col = jnp.arange(hw2, dtype=jnp.int32) % w2
    cmask = jnp.stack([(col != (w2 - 1)), (col != 0)]).astype(mxu_dtype)  # (2, hw2)

    (cw1, g1, b1, cw2, g2, b2, cw3, g3, b3, cw4, g4, b4) = params
    cout = cw4.shape[-1]

    def wmat(w_hwio):
        # (3,3,Ci,Co) HWIO -> (9, Co, Ci) per-tap weight tiles, k = ky*3 + kx.
        # TODO(synk): pad Co/Ci to sublane multiples (8 f32 / 16 bf16) at production
        # channel counts for denser MXU feeds.
        return jnp.transpose(w_hwio, (0, 1, 3, 2)).reshape(
            9, w_hwio.shape[-1], w_hwio.shape[-2]).astype(mxu_dtype)

    def cvec(v):
        # GN affine params as (C, 1) so they broadcast along the lane (spatial) axis.
        return jnp.asarray(v, jnp.float32).reshape(-1, 1)

    operands = (x, skip, uwt, uh, cmask,
                wmat(cw1), cvec(g1), cvec(b1),
                wmat(cw2), cvec(g2), cvec(b2),
                wmat(cw3), cvec(g3), cvec(b3),
                wmat(cw4), cvec(g4), cvec(b4))

    def const_spec(a):
        nd = a.ndim
        # TODO(synk): these operands have a constant index_map across the grid and
        # could be single-buffered (pipeline_mode) for extra VMEM headroom on v7x.
        return pl.BlockSpec(a.shape, lambda i, _nd=nd: (0,) * _nd)

    kern = functools.partial(_up_kernel, h=h, w=w, h2=h2, w2=w2)

    out = pl.pallas_call(
        kern,
        out_shape=jax.ShapeDtypeStruct((n, cout, hw2), jnp.float32),
        grid_spec=pltpu.PrefetchScalarGridSpec(
            num_scalar_prefetch=0,
            grid=(n // block_n,),
            in_specs=[
                pl.BlockSpec((block_n, cx * h, w), lambda i: (i, 0, 0)),
                pl.BlockSpec((block_n, cs, hw2), lambda i: (i, 0, 0)),
            ] + [const_spec(a) for a in operands[2:]],
            out_specs=pl.BlockSpec((block_n, cout, hw2), lambda i: (i, 0, 0)),
        ),
        compiler_params=pltpu.CompilerParams(
            dimension_semantics=("parallel",),
            # Explicit scoped-VMEM limit: the 16/32 MiB defaults (v5e/v6e) are the
            # real ceiling at production channel counts, not physical VMEM.
            vmem_limit_bytes=64 * 1024 * 1024,
        ),
    )(*operands)

    return out.reshape(n, cout, h2, w2)                                   # NCHW


def init_params(key, cin, cout):
    """Deterministic synthetic init.  Conv weights are (3,3,Ci,Co) (HWIO) == the
    transpose of PyTorch's (Co,Ci,3,3); GN affine params are (1,C)."""
    cmid = cin // 2
    ks = jax.random.split(key, 12)

    def conv_w(k, ci, co):
        return jax.random.normal(k, (3, 3, ci, co), jnp.float32) / jnp.sqrt(9.0 * ci)

    def gamma(k, c):
        return 1.0 + 0.1 * jax.random.normal(k, (1, c), jnp.float32)

    def beta(k, c):
        return 0.1 * jax.random.normal(k, (1, c), jnp.float32)

    return (conv_w(ks[0], cin, cin), gamma(ks[1], cin), beta(ks[2], cin),
            conv_w(ks[3], cin, cin), gamma(ks[4], cin), beta(ks[5], cin),
            conv_w(ks[6], cin, cmid), gamma(ks[7], cmid), beta(ks[8], cmid),
            conv_w(ks[9], cmid, cout), gamma(ks[10], cout), beta(ks[11], cout))


def up_reference(x_nchw, skip_nchw, params):
    """Pure-JAX (XLA) reference of the same forward pass, all-f32."""
    n, cx, h, w = x_nchw.shape
    _, cs, h2, w2 = skip_nchw.shape
    x = jnp.transpose(x_nchw, (0, 2, 3, 1))
    skip = jnp.transpose(skip_nchw, (0, 2, 3, 1))
    uh = bilinear_matrix_align_corners(h, h2)
    uw = bilinear_matrix_align_corners(w, w2)
    up = jnp.einsum('ph,nhwc,qw->npqc', uh, x, uw)
    z = jnp.concatenate([skip, up], axis=-1)

    def conv(t, wgt):
        return jax.lax.conv_general_dilated(
            t, wgt, (1, 1), 'SAME',
            dimension_numbers=('NHWC', 'HWIO', 'NHWC'),
            precision=jax.lax.Precision.HIGHEST)

    def gn(t, g, b, eps=1e-5):
        mean = jnp.mean(t, axis=(1, 2, 3), keepdims=True)
        var = jnp.mean((t - mean) ** 2, axis=(1, 2, 3), keepdims=True)
        c = t.shape[-1]
        return (t - mean) * jax.lax.rsqrt(var + eps) * g.reshape(1, 1, 1, c) \
            + b.reshape(1, 1, 1, c)

    (cw1, g1, b1, cw2, g2, b2, cw3, g3, b3, cw4, g4, b4) = params
    t = conv(z, cw1)
    t = _gelu(gn(t, g1, b1))
    t = conv(t, cw2)
    t = gn(t, g2, b2)
    y = _gelu(z + t)
    t = conv(y, cw3)
    t = _gelu(gn(t, g3, b3))
    t = conv(t, cw4)
    t = gn(t, g4, b4)
    return jnp.transpose(t, (0, 3, 1, 2))


if __name__ == "__main__":
    key = jax.random.PRNGKey(0)
    k_x, k_skip, k_p = jax.random.split(key, 3)

    N, CX, H, W = 2, 4, 8, 8          # low-res input x
    CS = 4                            # skip-connection channels
    H2, W2 = 2 * H, 2 * W             # after 2x upsample (matches skip spatial)
    CIN = CX + CS                     # Up(in_channels=8, ...)
    COUT = 4                          # Up(..., out_channels=4)

    x = jax.random.normal(k_x, (N, CX, H, W), jnp.float32)
    skip = jax.random.normal(k_skip, (N, CS, H2, W2), jnp.float32)
    params = init_params(k_p, CIN, COUT)

    ref = up_reference(x, skip, params)

    # 1) f32 MXU-feed validation path, one sample per grid step (grid=(2,)).
    out_f32 = jax.block_until_ready(
        up_forward(x, skip, params, mxu_dtype=jnp.float32, block_n=1))
    assert out_f32.shape == (N, COUT, H2, W2), out_f32.shape
    assert bool(jnp.all(jnp.isfinite(out_f32)))
    err32 = float(jnp.max(jnp.abs(out_f32 - ref)))
    assert err32 < 1e-2, f"f32 kernel/reference mismatch: max abs err = {err32}"

    # 2) default bf16 MXU-feed path, exercising the multi-sample-per-step path
    #    (block_n=2 -> grid=(1,)).  GN stats / GELU / residual stay in f32, so only
    #    matmul-operand rounding differs from the f32 reference.
    out_bf16 = jax.block_until_ready(up_forward(x, skip, params, block_n=2))
    assert out_bf16.shape == (N, COUT, H2, W2), out_bf16.shape
    assert bool(jnp.all(jnp.isfinite(out_bf16)))
    err16 = float(jnp.max(jnp.abs(out_bf16 - ref)))
    assert err16 < 1e-1, f"bf16 kernel/reference mismatch: max abs err = {err16}"

    print("KERNEL_OK")
</pallas_src>

<mosaic_0001>
module attributes {stable_mosaic.version = 11 : i64} {
  func.func @_up_kernel(%arg0: i32, %arg1: memref<1x32x8xf32, #tpu.memory_space<vmem>>, %arg2: memref<1x4x256xf32, #tpu.memory_space<vmem>>, %arg3: memref<8x16xf32, #tpu.memory_space<vmem>>, %arg4: memref<16x8xf32, #tpu.memory_space<vmem>>, %arg5: memref<2x256xf32, #tpu.memory_space<vmem>>, %arg6: memref<9x8x8xf32, #tpu.memory_space<vmem>>, %arg7: memref<8x1xf32, #tpu.memory_space<vmem>>, %arg8: memref<8x1xf32, #tpu.memory_space<vmem>>, %arg9: memref<9x8x8xf32, #tpu.memory_space<vmem>>, %arg10: memref<8x1xf32, #tpu.memory_space<vmem>>, %arg11: memref<8x1xf32, #tpu.memory_space<vmem>>, %arg12: memref<9x4x8xf32, #tpu.memory_space<vmem>>, %arg13: memref<4x1xf32, #tpu.memory_space<vmem>>, %arg14: memref<4x1xf32, #tpu.memory_space<vmem>>, %arg15: memref<9x4x4xf32, #tpu.memory_space<vmem>>, %arg16: memref<4x1xf32, #tpu.memory_space<vmem>>, %arg17: memref<4x1xf32, #tpu.memory_space<vmem>>, %arg18: memref<1x4x256xf32, #tpu.memory_space<vmem>>) attributes {dimension_semantics = [#tpu.dimension_semantics<parallel>], iteration_bounds = array<i64: 2>, scalar_prefetch = 0 : i64, scratch_operands = 0 : i64, tpu.core_type = #tpu.core_type<tc>, window_params = [{transform_indices = @transform_0, window_bounds = array<i64: 1, 32, 8>}, {transform_indices = @transform_1, window_bounds = array<i64: 1, 4, 256>}, {pipeline_mode = #tpu.pipeline_mode<synchronous>, transform_indices = @transform_2, window_bounds = array<i64: 8, 16>}, {pipeline_mode = #tpu.pipeline_mode<synchronous>, transform_indices = @transform_3, window_bounds = array<i64: 16, 8>}, {pipeline_mode = #tpu.pipeline_mode<synchronous>, transform_indices = @transform_4, window_bounds = array<i64: 2, 256>}, {pipeline_mode = #tpu.pipeline_mode<synchronous>, transform_indices = @transform_5, window_bounds = array<i64: 9, 8, 8>}, {pipeline_mode = #tpu.pipeline_mode<synchronous>, transform_indices = @transform_6, window_bounds = array<i64: 8, 1>}, {pipeline_mode = #tpu.pipeline_mode<synchronous>, transform_indices = @transform_7, window_bounds = array<i64: 8, 1>}, {pipeline_mode = #tpu.pipeline_mode<synchronous>, transform_indices = @transform_8, window_bounds = array<i64: 9, 8, 8>}, {pipeline_mode = #tpu.pipeline_mode<synchronous>, transform_indices = @transform_9, window_bounds = array<i64: 8, 1>}, {pipeline_mode = #tpu.pipeline_mode<synchronous>, transform_indices = @transform_10, window_bounds = array<i64: 8, 1>}, {pipeline_mode = #tpu.pipeline_mode<synchronous>, transform_indices = @transform_11, window_bounds = array<i64: 9, 4, 8>}, {pipeline_mode = #tpu.pipeline_mode<synchronous>, transform_indices = @transform_12, window_bounds = array<i64: 4, 1>}, {pipeline_mode = #tpu.pipeline_mode<synchronous>, transform_indices = @transform_13, window_bounds = array<i64: 4, 1>}, {pipeline_mode = #tpu.pipeline_mode<synchronous>, transform_indices = @transform_14, window_bounds = array<i64: 9, 4, 4>}, {pipeline_mode = #tpu.pipeline_mode<synchronous>, transform_indices = @transform_15, window_bounds = array<i64: 4, 1>}, {pipeline_mode = #tpu.pipeline_mode<synchronous>, transform_indices = @transform_16, window_bounds = array<i64: 4, 1>}, {transform_indices = @transform_17, window_bounds = array<i64: 1, 4, 256>}]} {
    %c0 = arith.constant 0 : index
    %c0_0 = arith.constant 0 : index
    %0 = vector.load %arg5[%c0, %c0_0] : memref<2x256xf32, #tpu.memory_space<vmem>>, vector<2x256xf32>
    %1 = vector.extract_strided_slice %0 {offsets = [0, 0], sizes = [1, 256], strides = [1, 1]} : vector<2x256xf32> to vector<1x256xf32>
    %2 = vector.extract_strided_slice %0 {offsets = [1, 0], sizes = [1, 256], strides = [1, 1]} : vector<2x256xf32> to vector<1x256xf32>
    %c0_1 = arith.constant 0 : index
    %c0_2 = arith.constant 0 : index
    %3 = vector.load %arg3[%c0_1, %c0_2] : memref<8x16xf32, #tpu.memory_space<vmem>>, vector<8x16xf32>
    %c0_3 = arith.constant 0 : index
    %c0_4 = arith.constant 0 : index
    %4 = vector.load %arg4[%c0_3, %c0_4] : memref<16x8xf32, #tpu.memory_space<vmem>>, vector<16x8xf32>
    %5 = vector.shape_cast %4 : vector<16x8xf32> to vector<1x16x8xf32>
    %6 = vector.broadcast %5 : vector<1x16x8xf32> to vector<4x16x8xf32>
    %c0_5 = arith.constant 0 : index
    %c0_6 = arith.constant 0 : index
    %c0_7 = arith.constant 0 : index
    %7 = vector.load %arg1[%c0_5, %c0_6, %c0_7] : memref<1x32x8xf32, #tpu.memory_space<vmem>>, vector<1x32x8xf32>
    %8 = vector.shape_cast %7 : vector<1x32x8xf32> to vector<32x8xf32>
    %cst = arith.constant dense<0.000000e+00> : vector<32x16xf32>
    %9 = tpu.matmul %8, %3, %cst {dimension_numbers = #tpu.dot_dimension_numbers<[1], [0], [0], [1], [0, 0, 1, 1], [], []>} : vector<32x8xf32>, vector<8x16xf32>, vector<32x16xf32> -> vector<32x16xf32>
    %10 = vector.shape_cast %9 : vector<32x16xf32> to vector<4x8x16xf32>
    %cst_8 = arith.constant dense<0.000000e+00> : vector<4x16x16xf32>
    %11 = tpu.matmul %6, %10, %cst_8 {dimension_numbers = #tpu.dot_dimension_numbers<[2], [1], [1], [2], [0, 0, 0, 1, 1, 2], [0], [0]>} : vector<4x16x8xf32>, vector<4x8x16xf32>, vector<4x16x16xf32> -> vector<4x16x16xf32>
    %12 = vector.shape_cast %11 : vector<4x16x16xf32> to vector<4x256xf32>
    %c0_9 = arith.constant 0 : index
    %c0_10 = arith.constant 0 : index
    %c0_11 = arith.constant 0 : index
    %13 = vector.load %arg2[%c0_9, %c0_10, %c0_11] : memref<1x4x256xf32, #tpu.memory_space<vmem>>, vector<1x4x256xf32>
    %14 = vector.shape_cast %13 : vector<1x4x256xf32> to vector<4x256xf32>
    %15 = tpu.concatenate %14, %12 in 0 : vector<4x256xf32>, vector<4x256xf32> -> vector<8x256xf32>
    %16 = vector.broadcast %1 : vector<1x256xf32> to vector<8x256xf32>
    %17 = arith.mulf %15, %16 : vector<8x256xf32>
    %18 = vector.broadcast %2 : vector<1x256xf32> to vector<8x256xf32>
    %19 = arith.mulf %15, %18 : vector<8x256xf32>
    %cst_12 = arith.constant 0.000000e+00 : f32
    %20 = vector.broadcast %cst_12 : f32 to vector<8x256xf32>
    %cst_13 = arith.constant 0.000000e+00 : f32
    %21 = vector.broadcast %cst_13 : f32 to vector<8x17xf32>
    %22 = vector.extract_strided_slice %17 {offsets = [0, 0], sizes = [8, 239], strides = [1, 1]} : vector<8x256xf32> to vector<8x239xf32>
    %23 = tpu.concatenate %21, %22 in 1 : vector<8x17xf32>, vector<8x239xf32> -> vector<8x256xf32>
    %c0_14 = arith.constant 0 : index
    %c0_15 = arith.constant 0 : index
    %c0_16 = arith.constant 0 : index
    %24 = vector.load %arg6[%c0_14, %c0_15, %c0_16] : memref<9x8x8xf32, #tpu.memory_space<vmem>>, vector<1x8x8xf32>
    %25 = vector.shape_cast %24 : vector<1x8x8xf32> to vector<8x8xf32>
    %cst_17 = arith.constant dense<0.000000e+00> : vector<8x256xf32>
    %26 = tpu.matmul %25, %23, %cst_17 {dimension_numbers = #tpu.dot_dimension_numbers<[1], [0], [0], [1], [0, 0, 1, 1], [], []>} : vector<8x8xf32>, vector<8x256xf32>, vector<8x256xf32> -> vector<8x256xf32>
    %27 = arith.addf %20, %26 : vector<8x256xf32>
    %cst_18 = arith.constant 0.000000e+00 : f32
    %28 = vector.broadcast %cst_18 : f32 to vector<8x16xf32>
    %29 = vector.extract_strided_slice %15 {offsets = [0, 0], sizes = [8, 240], strides = [1, 1]} : vector<8x256xf32> to vector<8x240xf32>
    %30 = tpu.concatenate %28, %29 in 1 : vector<8x16xf32>, vector<8x240xf32> -> vector<8x256xf32>
    %c1 = arith.constant 1 : index
    %c0_19 = arith.constant 0 : index
    %c0_20 = arith.constant 0 : index
    %31 = vector.load %arg6[%c1, %c0_19, %c0_20] : memref<9x8x8xf32, #tpu.memory_space<vmem>>, vector<1x8x8xf32>
    %32 = vector.shape_cast %31 : vector<1x8x8xf32> to vector<8x8xf32>
    %cst_21 = arith.constant dense<0.000000e+00> : vector<8x256xf32>
    %33 = tpu.matmul %32, %30, %cst_21 {dimension_numbers = #tpu.dot_dimension_numbers<[1], [0], [0], [1], [0, 0, 1, 1], [], []>} : vector<8x8xf32>, vector<8x256xf32>, vector<8x256xf32> -> vector<8x256xf32>
    %34 = arith.addf %27, %33 : vector<8x256xf32>
    %cst_22 = arith.constant 0.000000e+00 : f32
    %35 = vector.broadcast %cst_22 : f32 to vector<8x15xf32>
    %36 = vector.extract_strided_slice %19 {offsets = [0, 0], sizes = [8, 241], strides = [1, 1]} : vector<8x256xf32> to vector<8x241xf32>
    %37 = tpu.concatenate %35, %36 in 1 : vector<8x15xf32>, vector<8x241xf32> -> vector<8x256xf32>
    %c2 = arith.constant 2 : index
    %c0_23 = arith.constant 0 : index
    %c0_24 = arith.constant 0 : index
    %38 = vector.load %arg6[%c2, %c0_23, %c0_24] : memref<9x8x8xf32, #tpu.memory_space<vmem>>, vector<1x8x8xf32>
    %39 = vector.shape_cast %38 : vector<1x8x8xf32> to vector<8x8xf32>
    %cst_25 = arith.constant dense<0.000000e+00> : vector<8x256xf32>
    %40 = tpu.matmul %39, %37, %cst_25 {dimension_numbers = #tpu.dot_dimension_numbers<[1], [0], [0], [1], [0, 0, 1, 1], [], []>} : vector<8x8xf32>, vector<8x256xf32>, vector<8x256xf32> -> vector<8x256xf32>
    %41 = arith.addf %34, %40 : vector<8x256xf32>
    %cst_26 = arith.constant 0.000000e+00 : f32
    %42 = vector.broadcast %cst_26 : f32 to vector<8x1xf32>
    %43 = vector.extract_strided_slice %17 {offsets = [0, 0], sizes = [8, 255], strides = [1, 1]} : vector<8x256xf32> to vector<8x255xf32>
    %44 = tpu.concatenate %42, %43 in 1 : vector<8x1xf32>, vector<8x255xf32> -> vector<8x256xf32>
    %c3 = arith.constant 3 : index
    %c0_27 = arith.constant 0 : index
    %c0_28 = arith.constant 0 : index
    %45 = vector.load %arg6[%c3, %c0_27, %c0_28] : memref<9x8x8xf32, #tpu.memory_space<vmem>>, vector<1x8x8xf32>
    %46 = vector.shape_cast %45 : vector<1x8x8xf32> to vector<8x8xf32>
    %cst_29 = arith.constant dense<0.000000e+00> : vector<8x256xf32>
    %47 = tpu.matmul %46, %44, %cst_29 {dimension_numbers = #tpu.dot_dimension_numbers<[1], [0], [0], [1], [0, 0, 1, 1], [], []>} : vector<8x8xf32>, vector<8x256xf32>, vector<8x256xf32> -> vector<8x256xf32>
    %48 = arith.addf %41, %47 : vector<8x256xf32>
    %c4 = arith.constant 4 : index
    %c0_30 = arith.constant 0 : index
    %c0_31 = arith.constant 0 : index
    %49 = vector.load %arg6[%c4, %c0_30, %c0_31] : memref<9x8x8xf32, #tpu.memory_space<vmem>>, vector<1x8x8xf32>
    %50 = vector.shape_cast %49 : vector<1x8x8xf32> to vector<8x8xf32>
    %cst_32 = arith.constant dense<0.000000e+00> : vector<8x256xf32>
    %51 = tpu.matmul %50, %15, %cst_32 {dimension_numbers = #tpu.dot_dimension_numbers<[1], [0], [0], [1], [0, 0, 1, 1], [], []>} : vector<8x8xf32>, vector<8x256xf32>, vector<8x256xf32> -> vector<8x256xf32>
    %52 = arith.addf %48, %51 : vector<8x256xf32>
    %cst_33 = arith.constant 0.000000e+00 : f32
    %53 = vector.broadcast %cst_33 : f32 to vector<8x1xf32>
    %54 = vector.extract_strided_slice %19 {offsets = [0, 1], sizes = [8, 255], strides = [1, 1]} : vector<8x256xf32> to vector<8x255xf32>
    %55 = tpu.concatenate %54, %53 in 1 : vector<8x255xf32>, vector<8x1xf32> -> vector<8x256xf32>
    %c5 = arith.constant 5 : index
    %c0_34 = arith.constant 0 : index
    %c0_35 = arith.constant 0 : index
    %56 = vector.load %arg6[%c5, %c0_34, %c0_35] : memref<9x8x8xf32, #tpu.memory_space<vmem>>, vector<1x8x8xf32>
    %57 = vector.shape_cast %56 : vector<1x8x8xf32> to vector<8x8xf32>
    %cst_36 = arith.constant dense<0.000000e+00> : vector<8x256xf32>
    %58 = tpu.matmul %57, %55, %cst_36 {dimension_numbers = #tpu.dot_dimension_numbers<[1], [0], [0], [1], [0, 0, 1, 1], [], []>} : vector<8x8xf32>, vector<8x256xf32>, vector<8x256xf32> -> vector<8x256xf32>
    %59 = arith.addf %52, %58 : vector<8x256xf32>
    %cst_37 = arith.constant 0.000000e+00 : f32
    %60 = vector.broadcast %cst_37 : f32 to vector<8x15xf32>
    %61 = vector.extract_strided_slice %17 {offsets = [0, 15], sizes = [8, 241], strides = [1, 1]} : vector<8x256xf32> to vector<8x241xf32>
    %62 = tpu.concatenate %61, %60 in 1 : vector<8x241xf32>, vector<8x15xf32> -> vector<8x256xf32>
    %c6 = arith.constant 6 : index
    %c0_38 = arith.constant 0 : index
    %c0_39 = arith.constant 0 : index
    %63 = vector.load %arg6[%c6, %c0_38, %c0_39] : memref<9x8x8xf32, #tpu.memory_space<vmem>>, vector<1x8x8xf32>
    %64 = vector.shape_cast %63 : vector<1x8x8xf32> to vector<8x8xf32>
    %cst_40 = arith.constant dense<0.000000e+00> : vector<8x256xf32>
    %65 = tpu.matmul %64, %62, %cst_40 {dimension_numbers = #tpu.dot_dimension_numbers<[1], [0], [0], [1], [0, 0, 1, 1], [], []>} : vector<8x8xf32>, vector<8x256xf32>, vector<8x256xf32> -> vector<8x256xf32>
    %66 = arith.addf %59, %65 : vector<8x256xf32>
    %cst_41 = arith.constant 0.000000e+00 : f32
    %67 = vector.broadcast %cst_41 : f32 to vector<8x16xf32>
    %68 = vector.extract_strided_slice %15 {offsets = [0, 16], sizes = [8, 240], strides = [1, 1]} : vector<8x256xf32> to vector<8x240xf32>
    %69 = tpu.concatenate %68, %67 in 1 : vector<8x240xf32>, vector<8x16xf32> -> vector<8x256xf32>
    %c7 = arith.constant 7 : index
    %c0_42 = arith.constant 0 : index
    %c0_43 = arith.constant 0 : index
    %70 = vector.load %arg6[%c7, %c0_42, %c0_43] : memref<9x8x8xf32, #tpu.memory_space<vmem>>, vector<1x8x8xf32>
    %71 = vector.shape_cast %70 : vector<1x8x8xf32> to vector<8x8xf32>
    %cst_44 = arith.constant dense<0.000000e+00> : vector<8x256xf32>
    %72 = tpu.matmul %71, %69, %cst_44 {dimension_numbers = #tpu.dot_dimension_numbers<[1], [0], [0], [1], [0, 0, 1, 1], [], []>} : vector<8x8xf32>, vector<8x256xf32>, vector<8x256xf32> -> vector<8x256xf32>
    %73 = arith.addf %66, %72 : vector<8x256xf32>
    %cst_45 = arith.constant 0.000000e+00 : f32
    %74 = vector.broadcast %cst_45 : f32 to vector<8x17xf32>
    %75 = vector.extract_strided_slice %19 {offsets = [0, 17], sizes = [8, 239], strides = [1, 1]} : vector<8x256xf32> to vector<8x239xf32>
    %76 = tpu.concatenate %75, %74 in 1 : vector<8x239xf32>, vector<8x17xf32> -> vector<8x256xf32>
    %c8 = arith.constant 8 : index
    %c0_46 = arith.constant 0 : index
    %c0_47 = arith.constant 0 : index
    %77 = vector.load %arg6[%c8, %c0_46, %c0_47] : memref<9x8x8xf32, #tpu.memory_space<vmem>>, vector<1x8x8xf32>
    %78 = vector.shape_cast %77 : vector<1x8x8xf32> to vector<8x8xf32>
    %cst_48 = arith.constant dense<0.000000e+00> : vector<8x256xf32>
    %79 = tpu.matmul %78, %76, %cst_48 {dimension_numbers = #tpu.dot_dimension_numbers<[1], [0], [0], [1], [0, 0, 1, 1], [], []>} : vector<8x8xf32>, vector<8x256xf32>, vector<8x256xf32> -> vector<8x256xf32>
    %80 = arith.addf %73, %79 : vector<8x256xf32>
    %81 = vector.shape_cast %80 : vector<8x256xf32> to vector<1x8x256xf32>
    %cst_49 = arith.constant dense<0.000000e+00> : vector<1xf32>
    %82 = vector.multi_reduction <add>, %81, %cst_49 [1, 2] : vector<1x8x256xf32> to vector<1xf32>
    %83 = vector.shape_cast %82 : vector<1xf32> to vector<1x1x1xf32>
    %84 = vector.extract %83[0, 0, 0] : f32 from vector<1x1x1xf32>
    %cst_50 = arith.constant 4.8828125E-4 : f32
    %85 = arith.mulf %84, %cst_50 : f32
    %86 = arith.mulf %80, %80 : vector<8x256xf32>
    %87 = vector.shape_cast %86 : vector<8x256xf32> to vector<1x8x256xf32>
    %cst_51 = arith.constant dense<0.000000e+00> : vector<1xf32>
    %88 = vector.multi_reduction <add>, %87, %cst_51 [1, 2] : vector<1x8x256xf32> to vector<1xf32>
    %89 = vector.shape_cast %88 : vector<1xf32> to vector<1x1x1xf32>
    %90 = vector.extract %89[0, 0, 0] : f32 from vector<1x1x1xf32>
    %cst_52 = arith.constant 4.8828125E-4 : f32
    %91 = arith.mulf %90, %cst_52 : f32
    %92 = arith.mulf %85, %85 : f32
    %93 = arith.subf %91, %92 : f32
    %cst_53 = arith.constant 0.000000e+00 : f32
    %94 = arith.maximumf %93, %cst_53 : f32
    %cst_54 = arith.constant 9.99999974E-6 : f32
    %95 = arith.addf %94, %cst_54 : f32
    %96 = math.rsqrt %95 : f32
    %c0_55 = arith.constant 0 : index
    %c0_56 = arith.constant 0 : index
    %97 = vector.load %arg7[%c0_55, %c0_56] : memref<8x1xf32, #tpu.memory_space<vmem>>, vector<8x1xf32>
    %98 = vector.broadcast %96 : f32 to vector<8x1xf32>
    %99 = arith.mulf %97, %98 : vector<8x1xf32>
    %c0_57 = arith.constant 0 : index
    %c0_58 = arith.constant 0 : index
    %100 = vector.load %arg8[%c0_57, %c0_58] : memref<8x1xf32, #tpu.memory_space<vmem>>, vector<8x1xf32>
    %101 = vector.broadcast %85 : f32 to vector<8x1xf32>
    %102 = arith.mulf %101, %99 : vector<8x1xf32>
    %103 = arith.subf %100, %102 : vector<8x1xf32>
    %104 = vector.broadcast %99 : vector<8x1xf32> to vector<8x256xf32>
    %105 = arith.mulf %80, %104 : vector<8x256xf32>
    %106 = vector.broadcast %103 : vector<8x1xf32> to vector<8x256xf32>
    %107 = arith.addf %105, %106 : vector<8x256xf32>
    %cst_59 = arith.constant 5.000000e-01 : f32
    %108 = vector.broadcast %cst_59 : f32 to vector<8x256xf32>
    %109 = arith.mulf %108, %107 : vector<8x256xf32>
    %cst_60 = arith.constant 4.471500e-02 : f32
    %110 = vector.broadcast %cst_60 : f32 to vector<8x256xf32>
    %111 = arith.mulf %110, %107 : vector<8x256xf32>
    %112 = arith.mulf %111, %107 : vector<8x256xf32>
    %113 = arith.mulf %112, %107 : vector<8x256xf32>
    %114 = arith.addf %107, %113 : vector<8x256xf32>
    %cst_61 = arith.constant 0.797884583 : f32
    %115 = vector.broadcast %cst_61 : f32 to vector<8x256xf32>
    %116 = arith.mulf %115, %114 : vector<8x256xf32>
    %117 = math.tanh %116 : vector<8x256xf32>
    %cst_62 = arith.constant 1.000000e+00 : f32
    %118 = vector.broadcast %cst_62 : f32 to vector<8x256xf32>
    %119 = arith.addf %118, %117 : vector<8x256xf32>
    %120 = arith.mulf %109, %119 : vector<8x256xf32>
    %121 = vector.broadcast %1 : vector<1x256xf32> to vector<8x256xf32>
    %122 = arith.mulf %120, %121 : vector<8x256xf32>
    %123 = vector.broadcast %2 : vector<1x256xf32> to vector<8x256xf32>
    %124 = arith.mulf %120, %123 : vector<8x256xf32>
    %cst_63 = arith.constant 0.000000e+00 : f32
    %125 = vector.broadcast %cst_63 : f32 to vector<8x256xf32>
    %cst_64 = arith.constant 0.000000e+00 : f32
    %126 = vector.broadcast %cst_64 : f32 to vector<8x17xf32>
    %127 = vector.extract_strided_slice %122 {offsets = [0, 0], sizes = [8, 239], strides = [1, 1]} : vector<8x256xf32> to vector<8x239xf32>
    %128 = tpu.concatenate %126, %127 in 1 : vector<8x17xf32>, vector<8x239xf32> -> vector<8x256xf32>
    %c0_65 = arith.constant 0 : index
    %c0_66 = arith.constant 0 : index
    %c0_67 = arith.constant 0 : index
    %129 = vector.load %arg9[%c0_65, %c0_66, %c0_67] : memref<9x8x8xf32, #tpu.memory_space<vmem>>, vector<1x8x8xf32>
    %130 = vector.shape_cast %129 : vector<1x8x8xf32> to vector<8x8xf32>
    %cst_68 = arith.constant dense<0.000000e+00> : vector<8x256xf32>
    %131 = tpu.matmul %130, %128, %cst_68 {dimension_numbers = #tpu.dot_dimension_numbers<[1], [0], [0], [1], [0, 0, 1, 1], [], []>} : vector<8x8xf32>, vector<8x256xf32>, vector<8x256xf32> -> vector<8x256xf32>
    %132 = arith.addf %125, %131 : vector<8x256xf32>
    %cst_69 = arith.constant 0.000000e+00 : f32
    %133 = vector.broadcast %cst_69 : f32 to vector<8x16xf32>
    %134 = vector.extract_strided_slice %120 {offsets = [0, 0], sizes = [8, 240], strides = [1, 1]} : vector<8x256xf32> to vector<8x240xf32>
    %135 = tpu.concatenate %133, %134 in 1 : vector<8x16xf32>, vector<8x240xf32> -> vector<8x256xf32>
    %c1_70 = arith.constant 1 : index
    %c0_71 = arith.constant 0 : index
    %c0_72 = arith.constant 0 : index
    %136 = vector.load %arg9[%c1_70, %c0_71, %c0_72] : memref<9x8x8xf32, #tpu.memory_space<vmem>>, vector<1x8x8xf32>
    %137 = vector.shape_cast %136 : vector<1x8x8xf32> to vector<8x8xf32>
    %cst_73 = arith.constant dense<0.000000e+00> : vector<8x256xf32>
    %138 = tpu.matmul %137, %135, %cst_73 {dimension_numbers = #tpu.dot_dimension_numbers<[1], [0], [0], [1], [0, 0, 1, 1], [], []>} : vector<8x8xf32>, vector<8x256xf32>, vector<8x256xf32> -> vector<8x256xf32>
    %139 = arith.addf %132, %138 : vector<8x256xf32>
    %cst_74 = arith.constant 0.000000e+00 : f32
    %140 = vector.broadcast %cst_74 : f32 to vector<8x15xf32>
    %141 = vector.extract_strided_slice %124 {offsets = [0, 0], sizes = [8, 241], strides = [1, 1]} : vector<8x256xf32> to vector<8x241xf32>
    %142 = tpu.concatenate %140, %141 in 1 : vector<8x15xf32>, vector<8x241xf32> -> vector<8x256xf32>
    %c2_75 = arith.constant 2 : index
    %c0_76 = arith.constant 0 : index
    %c0_77 = arith.constant 0 : index
    %143 = vector.load %arg9[%c2_75, %c0_76, %c0_77] : memref<9x8x8xf32, #tpu.memory_space<vmem>>, vector<1x8x8xf32>
    %144 = vector.shape_cast %143 : vector<1x8x8xf32> to vector<8x8xf32>
    %cst_78 = arith.constant dense<0.000000e+00> : vector<8x256xf32>
    %145 = tpu.matmul %144, %142, %cst_78 {dimension_numbers = #tpu.dot_dimension_numbers<[1], [0], [0], [1], [0, 0, 1, 1], [], []>} : vector<8x8xf32>, vector<8x256xf32>, vector<8x256xf32> -> vector<8x256xf32>
    %146 = arith.addf %139, %145 : vector<8x256xf32>
    %cst_79 = arith.constant 0.000000e+00 : f32
    %147 = vector.broadcast %cst_79 : f32 to vector<8x1xf32>
    %148 = vector.extract_strided_slice %122 {offsets = [0, 0], sizes = [8, 255], strides = [1, 1]} : vector<8x256xf32> to vector<8x255xf32>
    %149 = tpu.concatenate %147, %148 in 1 : vector<8x1xf32>, vector<8x255xf32> -> vector<8x256xf32>
    %c3_80 = arith.constant 3 : index
    %c0_81 = arith.constant 0 : index
    %c0_82 = arith.constant 0 : index
    %150 = vector.load %arg9[%c3_80, %c0_81, %c0_82] : memref<9x8x8xf32, #tpu.memory_space<vmem>>, vector<1x8x8xf32>
    %151 = vector.shape_cast %150 : vector<1x8x8xf32> to vector<8x8xf32>
    %cst_83 = arith.constant dense<0.000000e+00> : vector<8x256xf32>
    %152 = tpu.matmul %151, %149, %cst_83 {dimension_numbers = #tpu.dot_dimension_numbers<[1], [0], [0], [1], [0, 0, 1, 1], [], []>} : vector<8x8xf32>, vector<8x256xf32>, vector<8x256xf32> -> vector<8x256xf32>
    %153 = arith.addf %146, %152 : vector<8x256xf32>
    %c4_84 = arith.constant 4 : index
    %c0_85 = arith.constant 0 : index
    %c0_86 = arith.constant 0 : index
    %154 = vector.load %arg9[%c4_84, %c0_85, %c0_86] : memref<9x8x8xf32, #tpu.memory_space<vmem>>, vector<1x8x8xf32>
    %155 = vector.shape_cast %154 : vector<1x8x8xf32> to vector<8x8xf32>
    %cst_87 = arith.constant dense<0.000000e+00> : vector<8x256xf32>
    %156 = tpu.matmul %155, %120, %cst_87 {dimension_numbers = #tpu.dot_dimension_numbers<[1], [0], [0], [1], [0, 0, 1, 1], [], []>} : vector<8x8xf32>, vector<8x256xf32>, vector<8x256xf32> -> vector<8x256xf32>
    %157 = arith.addf %153, %156 : vector<8x256xf32>
    %cst_88 = arith.constant 0.000000e+00 : f32
    %158 = vector.broadcast %cst_88 : f32 to vector<8x1xf32>
    %159 = vector.extract_strided_slice %124 {offsets = [0, 1], sizes = [8, 255], strides = [1, 1]} : vector<8x256xf32> to vector<8x255xf32>
    %160 = tpu.concatenate %159, %158 in 1 : vector<8x255xf32>, vector<8x1xf32> -> vector<8x256xf32>
    %c5_89 = arith.constant 5 : index
    %c0_90 = arith.constant 0 : index
    %c0_91 = arith.constant 0 : index
    %161 = vector.load %arg9[%c5_89, %c0_90, %c0_91] : memref<9x8x8xf32, #tpu.memory_space<vmem>>, vector<1x8x8xf32>
    %162 = vector.shape_cast %161 : vector<1x8x8xf32> to vector<8x8xf32>
    %cst_92 = arith.constant dense<0.000000e+00> : vector<8x256xf32>
    %163 = tpu.matmul %162, %160, %cst_92 {dimension_numbers = #tpu.dot_dimension_numbers<[1], [0], [0], [1], [0, 0, 1, 1], [], []>} : vector<8x8xf32>, vector<8x256xf32>, vector<8x256xf32> -> vector<8x256xf32>
    %164 = arith.addf %157, %163 : vector<8x256xf32>
    %cst_93 = arith.constant 0.000000e+00 : f32
    %165 = vector.broadcast %cst_93 : f32 to vector<8x15xf32>
    %166 = vector.extract_strided_slice %122 {offsets = [0, 15], sizes = [8, 241], strides = [1, 1]} : vector<8x256xf32> to vector<8x241xf32>
    %167 = tpu.concatenate %166, %165 in 1 : vector<8x241xf32>, vector<8x15xf32> -> vector<8x256xf32>
    %c6_94 = arith.constant 6 : index
    %c0_95 = arith.constant 0 : index
    %c0_96 = arith.constant 0 : index
    %168 = vector.load %arg9[%c6_94, %c0_95, %c0_96] : memref<9x8x8xf32, #tpu.memory_space<vmem>>, vector<1x8x8xf32>
    %169 = vector.shape_cast %168 : vector<1x8x8xf32> to vector<8x8xf32>
    %cst_97 = arith.constant dense<0.000000e+00> : vector<8x256xf32>
    %170 = tpu.matmul %169, %167, %cst_97 {dimension_numbers = #tpu.dot_dimension_numbers<[1], [0], [0], [1], [0, 0, 1, 1], [], []>} : vector<8x8xf32>, vector<8x256xf32>, vector<8x256xf32> -> vector<8x256xf32>
    %171 = arith.addf %164, %170 : vector<8x256xf32>
    %cst_98 = arith.constant 0.000000e+00 : f32
    %172 = vector.broadcast %cst_98 : f32 to vector<8x16xf32>
    %173 = vector.extract_strided_slice %120 {offsets = [0, 16], sizes = [8, 240], strides = [1, 1]} : vector<8x256xf32> to vector<8x240xf32>
    %174 = tpu.concatenate %173, %172 in 1 : vector<8x240xf32>, vector<8x16xf32> -> vector<8x256xf32>
    %c7_99 = arith.constant 7 : index
    %c0_100 = arith.constant 0 : index
    %c0_101 = arith.constant 0 : index
    %175 = vector.load %arg9[%c7_99, %c0_100, %c0_101] : memref<9x8x8xf32, #tpu.memory_space<vmem>>, vector<1x8x8xf32>
    %176 = vector.shape_cast %175 : vector<1x8x8xf32> to vector<8x8xf32>
    %cst_102 = arith.constant dense<0.000000e+00> : vector<8x256xf32>
    %177 = tpu.matmul %176, %174, %cst_102 {dimension_numbers = #tpu.dot_dimension_numbers<[1], [0], [0], [1], [0, 0, 1, 1], [], []>} : vector<8x8xf32>, vector<8x256xf32>, vector<8x256xf32> -> vector<8x256xf32>
    %178 = arith.addf %171, %177 : vector<8x256xf32>
    %cst_103 = arith.constant 0.000000e+00 : f32
    %179 = vector.broadcast %cst_103 : f32 to vector<8x17xf32>
    %180 = vector.extract_strided_slice %124 {offsets = [0, 17], sizes = [8, 239], strides = [1, 1]} : vector<8x256xf32> to vector<8x239xf32>
    %181 = tpu.concatenate %180, %179 in 1 : vector<8x239xf32>, vector<8x17xf32> -> vector<8x256xf32>
    %c8_104 = arith.constant 8 : index
    %c0_105 = arith.constant 0 : index
    %c0_106 = arith.constant 0 : index
    %182 = vector.load %arg9[%c8_104, %c0_105, %c0_106] : memref<9x8x8xf32, #tpu.memory_space<vmem>>, vector<1x8x8xf32>
    %183 = vector.shape_cast %182 : vector<1x8x8xf32> to vector<8x8xf32>
    %cst_107 = arith.constant dense<0.000000e+00> : vector<8x256xf32>
    %184 = tpu.matmul %183, %181, %cst_107 {dimension_numbers = #tpu.dot_dimension_numbers<[1], [0], [0], [1], [0, 0, 1, 1], [], []>} : vector<8x8xf32>, vector<8x256xf32>, vector<8x256xf32> -> vector<8x256xf32>
    %185 = arith.addf %178, %184 : vector<8x256xf32>
    %186 = vector.shape_cast %185 : vector<8x256xf32> to vector<1x8x256xf32>
    %cst_108 = arith.constant dense<0.000000e+00> : vector<1xf32>
    %187 = vector.multi_reduction <add>, %186, %cst_108 [1, 2] : vector<1x8x256xf32> to vector<1xf32>
    %188 = vector.shape_cast %187 : vector<1xf32> to vector<1x1x1xf32>
    %189 = vector.extract %188[0, 0, 0] : f32 from vector<1x1x1xf32>
    %cst_109 = arith.constant 4.8828125E-4 : f32
    %190 = arith.mulf %189, %cst_109 : f32
    %191 = arith.mulf %185, %185 : vector<8x256xf32>
    %192 = vector.shape_cast %191 : vector<8x256xf32> to vector<1x8x256xf32>
    %cst_110 = arith.constant dense<0.000000e+00> : vector<1xf32>
    %193 = vector.multi_reduction <add>, %192, %cst_110 [1, 2] : vector<1x8x256xf32> to vector<1xf32>
    %194 = vector.shape_cast %193 : vector<1xf32> to vector<1x1x1xf32>
    %195 = vector.extract %194[0, 0, 0] : f32 from vector<1x1x1xf32>
    %cst_111 = arith.constant 4.8828125E-4 : f32
    %196 = arith.mulf %195, %cst_111 : f32
    %197 = arith.mulf %190, %190 : f32
    %198 = arith.subf %196, %197 : f32
    %cst_112 = arith.constant 0.000000e+00 : f32
    %199 = arith.maximumf %198, %cst_112 : f32
    %cst_113 = arith.constant 9.99999974E-6 : f32
    %200 = arith.addf %199, %cst_113 : f32
    %201 = math.rsqrt %200 : f32
    %c0_114 = arith.constant 0 : index
    %c0_115 = arith.constant 0 : index
    %202 = vector.load %arg10[%c0_114, %c0_115] : memref<8x1xf32, #tpu.memory_space<vmem>>, vector<8x1xf32>
    %203 = vector.broadcast %201 : f32 to vector<8x1xf32>
    %204 = arith.mulf %202, %203 : vector<8x1xf32>
    %c0_116 = arith.constant 0 : index
    %c0_117 = arith.constant 0 : index
    %205 = vector.load %arg11[%c0_116, %c0_117] : memref<8x1xf32, #tpu.memory_space<vmem>>, vector<8x1xf32>
    %206 = vector.broadcast %190 : f32 to vector<8x1xf32>
    %207 = arith.mulf %206, %204 : vector<8x1xf32>
    %208 = arith.subf %205, %207 : vector<8x1xf32>
    %209 = vector.broadcast %204 : vector<8x1xf32> to vector<8x256xf32>
    %210 = arith.mulf %185, %209 : vector<8x256xf32>
    %211 = vector.broadcast %208 : vector<8x1xf32> to vector<8x256xf32>
    %212 = arith.addf %210, %211 : vector<8x256xf32>
    %213 = arith.addf %15, %212 : vector<8x256xf32>
    %cst_118 = arith.constant 5.000000e-01 : f32
    %214 = vector.broadcast %cst_118 : f32 to vector<8x256xf32>
    %215 = arith.mulf %214, %213 : vector<8x256xf32>
    %cst_119 = arith.constant 4.471500e-02 : f32
    %216 = vector.broadcast %cst_119 : f32 to vector<8x256xf32>
    %217 = arith.mulf %216, %213 : vector<8x256xf32>
    %218 = arith.mulf %217, %213 : vector<8x256xf32>
    %219 = arith.mulf %218, %213 : vector<8x256xf32>
    %220 = arith.addf %213, %219 : vector<8x256xf32>
    %cst_120 = arith.constant 0.797884583 : f32
    %221 = vector.broadcast %cst_120 : f32 to vector<8x256xf32>
    %222 = arith.mulf %221, %220 : vector<8x256xf32>
    %223 = math.tanh %222 : vector<8x256xf32>
    %cst_121 = arith.constant 1.000000e+00 : f32
    %224 = vector.broadcast %cst_121 : f32 to vector<8x256xf32>
    %225 = arith.addf %224, %223 : vector<8x256xf32>
    %226 = arith.mulf %215, %225 : vector<8x256xf32>
    %227 = vector.broadcast %1 : vector<1x256xf32> to vector<8x256xf32>
    %228 = arith.mulf %226, %227 : vector<8x256xf32>
    %229 = vector.broadcast %2 : vector<1x256xf32> to vector<8x256xf32>
    %230 = arith.mulf %226, %229 : vector<8x256xf32>
    %cst_122 = arith.constant 0.000000e+00 : f32
    %231 = vector.broadcast %cst_122 : f32 to vector<4x256xf32>
    %cst_123 = arith.constant 0.000000e+00 : f32
    %232 = vector.broadcast %cst_123 : f32 to vector<8x17xf32>
    %233 = vector.extract_strided_slice %228 {offsets = [0, 0], sizes = [8, 239], strides = [1, 1]} : vector<8x256xf32> to vector<8x239xf32>
    %234 = tpu.concatenate %232, %233 in 1 : vector<8x17xf32>, vector<8x239xf32> -> vector<8x256xf32>
    %c0_124 = arith.constant 0 : index
    %c0_125 = arith.constant 0 : index
    %c0_126 = arith.constant 0 : index
    %235 = vector.load %arg12[%c0_124, %c0_125, %c0_126] : memref<9x4x8xf32, #tpu.memory_space<vmem>>, vector<1x4x8xf32>
    %236 = vector.shape_cast %235 : vector<1x4x8xf32> to vector<4x8xf32>
    %cst_127 = arith.constant dense<0.000000e+00> : vector<4x256xf32>
    %237 = tpu.matmul %236, %234, %cst_127 {dimension_numbers = #tpu.dot_dimension_numbers<[1], [0], [0], [1], [0, 0, 1, 1], [], []>} : vector<4x8xf32>, vector<8x256xf32>, vector<4x256xf32> -> vector<4x256xf32>
    %238 = arith.addf %231, %237 : vector<4x256xf32>
    %cst_128 = arith.constant 0.000000e+00 : f32
    %239 = vector.broadcast %cst_128 : f32 to vector<8x16xf32>
    %240 = vector.extract_strided_slice %226 {offsets = [0, 0], sizes = [8, 240], strides = [1, 1]} : vector<8x256xf32> to vector<8x240xf32>
    %241 = tpu.concatenate %239, %240 in 1 : vector<8x16xf32>, vector<8x240xf32> -> vector<8x256xf32>
    %c1_129 = arith.constant 1 : index
    %c0_130 = arith.constant 0 : index
    %c0_131 = arith.constant 0 : index
    %242 = vector.load %arg12[%c1_129, %c0_130, %c0_131] : memref<9x4x8xf32, #tpu.memory_space<vmem>>, vector<1x4x8xf32>
    %243 = vector.shape_cast %242 : vector<1x4x8xf32> to vector<4x8xf32>
    %cst_132 = arith.constant dense<0.000000e+00> : vector<4x256xf32>
    %244 = tpu.matmul %243, %241, %cst_132 {dimension_numbers = #tpu.dot_dimension_numbers<[1], [0], [0], [1], [0, 0, 1, 1], [], []>} : vector<4x8xf32>, vector<8x256xf32>, vector<4x256xf32> -> vector<4x256xf32>
    %245 = arith.addf %238, %244 : vector<4x256xf32>
    %cst_133 = arith.constant 0.000000e+00 : f32
    %246 = vector.broadcast %cst_133 : f32 to vector<8x15xf32>
    %247 = vector.extract_strided_slice %230 {offsets = [0, 0], sizes = [8, 241], strides = [1, 1]} : vector<8x256xf32> to vector<8x241xf32>
    %248 = tpu.concatenate %246, %247 in 1 : vector<8x15xf32>, vector<8x241xf32> -> vector<8x256xf32>
    %c2_134 = arith.constant 2 : index
    %c0_135 = arith.constant 0 : index
    %c0_136 = arith.constant 0 : index
    %249 = vector.load %arg12[%c2_134, %c0_135, %c0_136] : memref<9x4x8xf32, #tpu.memory_space<vmem>>, vector<1x4x8xf32>
    %250 = vector.shape_cast %249 : vector<1x4x8xf32> to vector<4x8xf32>
    %cst_137 = arith.constant dense<0.000000e+00> : vector<4x256xf32>
    %251 = tpu.matmul %250, %248, %cst_137 {dimension_numbers = #tpu.dot_dimension_numbers<[1], [0], [0], [1], [0, 0, 1, 1], [], []>} : vector<4x8xf32>, vector<8x256xf32>, vector<4x256xf32> -> vector<4x256xf32>
    %252 = arith.addf %245, %251 : vector<4x256xf32>
    %cst_138 = arith.constant 0.000000e+00 : f32
    %253 = vector.broadcast %cst_138 : f32 to vector<8x1xf32>
    %254 = vector.extract_strided_slice %228 {offsets = [0, 0], sizes = [8, 255], strides = [1, 1]} : vector<8x256xf32> to vector<8x255xf32>
    %255 = tpu.concatenate %253, %254 in 1 : vector<8x1xf32>, vector<8x255xf32> -> vector<8x256xf32>
    %c3_139 = arith.constant 3 : index
    %c0_140 = arith.constant 0 : index
    %c0_141 = arith.constant 0 : index
    %256 = vector.load %arg12[%c3_139, %c0_140, %c0_141] : memref<9x4x8xf32, #tpu.memory_space<vmem>>, vector<1x4x8xf32>
    %257 = vector.shape_cast %256 : vector<1x4x8xf32> to vector<4x8xf32>
    %cst_142 = arith.constant dense<0.000000e+00> : vector<4x256xf32>
    %258 = tpu.matmul %257, %255, %cst_142 {dimension_numbers = #tpu.dot_dimension_numbers<[1], [0], [0], [1], [0, 0, 1, 1], [], []>} : vector<4x8xf32>, vector<8x256xf32>, vector<4x256xf32> -> vector<4x256xf32>
    %259 = arith.addf %252, %258 : vector<4x256xf32>
    %c4_143 = arith.constant 4 : index
    %c0_144 = arith.constant 0 : index
    %c0_145 = arith.constant 0 : index
    %260 = vector.load %arg12[%c4_143, %c0_144, %c0_145] : memref<9x4x8xf32, #tpu.memory_space<vmem>>, vector<1x4x8xf32>
    %261 = vector.shape_cast %260 : vector<1x4x8xf32> to vector<4x8xf32>
    %cst_146 = arith.constant dense<0.000000e+00> : vector<4x256xf32>
    %262 = tpu.matmul %261, %226, %cst_146 {dimension_numbers = #tpu.dot_dimension_numbers<[1], [0], [0], [1], [0, 0, 1, 1], [], []>} : vector<4x8xf32>, vector<8x256xf32>, vector<4x256xf32> -> vector<4x256xf32>
    %263 = arith.addf %259, %262 : vector<4x256xf32>
    %cst_147 = arith.constant 0.000000e+00 : f32
    %264 = vector.broadcast %cst_147 : f32 to vector<8x1xf32>
    %265 = vector.extract_strided_slice %230 {offsets = [0, 1], sizes = [8, 255], strides = [1, 1]} : vector<8x256xf32> to vector<8x255xf32>
    %266 = tpu.concatenate %265, %264 in 1 : vector<8x255xf32>, vector<8x1xf32> -> vector<8x256xf32>
    %c5_148 = arith.constant 5 : index
    %c0_149 = arith.constant 0 : index
    %c0_150 = arith.constant 0 : index
    %267 = vector.load %arg12[%c5_148, %c0_149, %c0_150] : memref<9x4x8xf32, #tpu.memory_space<vmem>>, vector<1x4x8xf32>
    %268 = vector.shape_cast %267 : vector<1x4x8xf32> to vector<4x8xf32>
    %cst_151 = arith.constant dense<0.000000e+00> : vector<4x256xf32>
    %269 = tpu.matmul %268, %266, %cst_151 {dimension_numbers = #tpu.dot_dimension_numbers<[1], [0], [0], [1], [0, 0, 1, 1], [], []>} : vector<4x8xf32>, vector<8x256xf32>, vector<4x256xf32> -> vector<4x256xf32>
    %270 = arith.addf %263, %269 : vector<4x256xf32>
    %cst_152 = arith.constant 0.000000e+00 : f32
    %271 = vector.broadcast %cst_152 : f32 to vector<8x15xf32>
    %272 = vector.extract_strided_slice %228 {offsets = [0, 15], sizes = [8, 241], strides = [1, 1]} : vector<8x256xf32> to vector<8x241xf32>
    %273 = tpu.concatenate %272, %271 in 1 : vector<8x241xf32>, vector<8x15xf32> -> vector<8x256xf32>
    %c6_153 = arith.constant 6 : index
    %c0_154 = arith.constant 0 : index
    %c0_155 = arith.constant 0 : index
    %274 = vector.load %arg12[%c6_153, %c0_154, %c0_155] : memref<9x4x8xf32, #tpu.memory_space<vmem>>, vector<1x4x8xf32>
    %275 = vector.shape_cast %274 : vector<1x4x8xf32> to vector<4x8xf32>
    %cst_156 = arith.constant dense<0.000000e+00> : vector<4x256xf32>
    %276 = tpu.matmul %275, %273, %cst_156 {dimension_numbers = #tpu.dot_dimension_numbers<[1], [0], [0], [1], [0, 0, 1, 1], [], []>} : vector<4x8xf32>, vector<8x256xf32>, vector<4x256xf32> -> vector<4x256xf32>
    %277 = arith.addf %270, %276 : vector<4x256xf32>
    %cst_157 = arith.constant 0.000000e+00 : f32
    %278 = vector.broadcast %cst_157 : f32 to vector<8x16xf32>
    %279 = vector.extract_strided_slice %226 {offsets = [0, 16], sizes = [8, 240], strides = [1, 1]} : vector<8x256xf32> to vector<8x240xf32>
    %280 = tpu.concatenate %279, %278 in 1 : vector<8x240xf32>, vector<8x16xf32> -> vector<8x256xf32>
    %c7_158 = arith.constant 7 : index
    %c0_159 = arith.constant 0 : index
    %c0_160 = arith.constant 0 : index
    %281 = vector.load %arg12[%c7_158, %c0_159, %c0_160] : memref<9x4x8xf32, #tpu.memory_space<vmem>>, vector<1x4x8xf32>
    %282 = vector.shape_cast %281 : vector<1x4x8xf32> to vector<4x8xf32>
    %cst_161 = arith.constant dense<0.000000e+00> : vector<4x256xf32>
    %283 = tpu.matmul %282, %280, %cst_161 {dimension_numbers = #tpu.dot_dimension_numbers<[1], [0], [0], [1], [0, 0, 1, 1], [], []>} : vector<4x8xf32>, vector<8x256xf32>, vector<4x256xf32> -> vector<4x256xf32>
    %284 = arith.addf %277, %283 : vector<4x256xf32>
    %cst_162 = arith.constant 0.000000e+00 : f32
    %285 = vector.broadcast %cst_162 : f32 to vector<8x17xf32>
    %286 = vector.extract_strided_slice %230 {offsets = [0, 17], sizes = [8, 239], strides = [1, 1]} : vector<8x256xf32> to vector<8x239xf32>
    %287 = tpu.concatenate %286, %285 in 1 : vector<8x239xf32>, vector<8x17xf32> -> vector<8x256xf32>
    %c8_163 = arith.constant 8 : index
    %c0_164 = arith.constant 0 : index
    %c0_165 = arith.constant 0 : index
    %288 = vector.load %arg12[%c8_163, %c0_164, %c0_165] : memref<9x4x8xf32, #tpu.memory_space<vmem>>, vector<1x4x8xf32>
    %289 = vector.shape_cast %288 : vector<1x4x8xf32> to vector<4x8xf32>
    %cst_166 = arith.constant dense<0.000000e+00> : vector<4x256xf32>
    %290 = tpu.matmul %289, %287, %cst_166 {dimension_numbers = #tpu.dot_dimension_numbers<[1], [0], [0], [1], [0, 0, 1, 1], [], []>} : vector<4x8xf32>, vector<8x256xf32>, vector<4x256xf32> -> vector<4x256xf32>
    %291 = arith.addf %284, %290 : vector<4x256xf32>
    %292 = vector.shape_cast %291 : vector<4x256xf32> to vector<1x4x256xf32>
    %cst_167 = arith.constant dense<0.000000e+00> : vector<1xf32>
    %293 = vector.multi_reduction <add>, %292, %cst_167 [1, 2] : vector<1x4x256xf32> to vector<1xf32>
    %294 = vector.shape_cast %293 : vector<1xf32> to vector<1x1x1xf32>
    %295 = vector.extract %294[0, 0, 0] : f32 from vector<1x1x1xf32>
    %cst_168 = arith.constant 9.765625E-4 : f32
    %296 = arith.mulf %295, %cst_168 : f32
    %297 = arith.mulf %291, %291 : vector<4x256xf32>
    %298 = vector.shape_cast %297 : vector<4x256xf32> to vector<1x4x256xf32>
    %cst_169 = arith.constant dense<0.000000e+00> : vector<1xf32>
    %299 = vector.multi_reduction <add>, %298, %cst_169 [1, 2] : vector<1x4x256xf32> to vector<1xf32>
    %300 = vector.shape_cast %299 : vector<1xf32> to vector<1x1x1xf32>
    %301 = vector.extract %300[0, 0, 0] : f32 from vector<1x1x1xf32>
    %cst_170 = arith.constant 9.765625E-4 : f32
    %302 = arith.mulf %301, %cst_170 : f32
    %303 = arith.mulf %296, %296 : f32
    %304 = arith.subf %302, %303 : f32
    %cst_171 = arith.constant 0.000000e+00 : f32
    %305 = arith.maximumf %304, %cst_171 : f32
    %cst_172 = arith.constant 9.99999974E-6 : f32
    %306 = arith.addf %305, %cst_172 : f32
    %307 = math.rsqrt %306 : f32
    %c0_173 = arith.constant 0 : index
    %c0_174 = arith.constant 0 : index
    %308 = vector.load %arg13[%c0_173, %c0_174] : memref<4x1xf32, #tpu.memory_space<vmem>>, vector<4x1xf32>
    %309 = vector.broadcast %307 : f32 to vector<4x1xf32>
    %310 = arith.mulf %308, %309 : vector<4x1xf32>
    %c0_175 = arith.constant 0 : index
    %c0_176 = arith.constant 0 : index
    %311 = vector.load %arg14[%c0_175, %c0_176] : memref<4x1xf32, #tpu.memory_space<vmem>>, vector<4x1xf32>
    %312 = vector.broadcast %296 : f32 to vector<4x1xf32>
    %313 = arith.mulf %312, %310 : vector<4x1xf32>
    %314 = arith.subf %311, %313 : vector<4x1xf32>
    %315 = vector.broadcast %310 : vector<4x1xf32> to vector<4x256xf32>
    %316 = arith.mulf %291, %315 : vector<4x256xf32>
    %317 = vector.broadcast %314 : vector<4x1xf32> to vector<4x256xf32>
    %318 = arith.addf %316, %317 : vector<4x256xf32>
    %cst_177 = arith.constant 5.000000e-01 : f32
    %319 = vector.broadcast %cst_177 : f32 to vector<4x256xf32>
    %320 = arith.mulf %319, %318 : vector<4x256xf32>
    %cst_178 = arith.constant 4.471500e-02 : f32
    %321 = vector.broadcast %cst_178 : f32 to vector<4x256xf32>
    %322 = arith.mulf %321, %318 : vector<4x256xf32>
    %323 = arith.mulf %322, %318 : vector<4x256xf32>
    %324 = arith.mulf %323, %318 : vector<4x256xf32>
    %325 = arith.addf %318, %324 : vector<4x256xf32>
    %cst_179 = arith.constant 0.797884583 : f32
    %326 = vector.broadcast %cst_179 : f32 to vector<4x256xf32>
    %327 = arith.mulf %326, %325 : vector<4x256xf32>
    %328 = math.tanh %327 : vector<4x256xf32>
    %cst_180 = arith.constant 1.000000e+00 : f32
    %329 = vector.broadcast %cst_180 : f32 to vector<4x256xf32>
    %330 = arith.addf %329, %328 : vector<4x256xf32>
    %331 = arith.mulf %320, %330 : vector<4x256xf32>
    %332 = vector.broadcast %1 : vector<1x256xf32> to vector<4x256xf32>
    %333 = arith.mulf %331, %332 : vector<4x256xf32>
    %334 = vector.broadcast %2 : vector<1x256xf32> to vector<4x256xf32>
    %335 = arith.mulf %331, %334 : vector<4x256xf32>
    %cst_181 = arith.constant 0.000000e+00 : f32
    %336 = vector.broadcast %cst_181 : f32 to vector<4x256xf32>
    %cst_182 = arith.constant 0.000000e+00 : f32
    %337 = vector.broadcast %cst_182 : f32 to vector<4x17xf32>
    %338 = vector.extract_strided_slice %333 {offsets = [0, 0], sizes = [4, 239], strides = [1, 1]} : vector<4x256xf32> to vector<4x239xf32>
    %339 = tpu.concatenate %337, %338 in 1 : vector<4x17xf32>, vector<4x239xf32> -> vector<4x256xf32>
    %c0_183 = arith.constant 0 : index
    %c0_184 = arith.constant 0 : index
    %c0_185 = arith.constant 0 : index
    %340 = vector.load %arg15[%c0_183, %c0_184, %c0_185] : memref<9x4x4xf32, #tpu.memory_space<vmem>>, vector<1x4x4xf32>
    %341 = vector.shape_cast %340 : vector<1x4x4xf32> to vector<4x4xf32>
    %cst_186 = arith.constant dense<0.000000e+00> : vector<4x256xf32>
    %342 = tpu.matmul %341, %339, %cst_186 {dimension_numbers = #tpu.dot_dimension_numbers<[1], [0], [0], [1], [0, 0, 1, 1], [], []>} : vector<4x4xf32>, vector<4x256xf32>, vector<4x256xf32> -> vector<4x256xf32>
    %343 = arith.addf %336, %342 : vector<4x256xf32>
    %cst_187 = arith.constant 0.000000e+00 : f32
    %344 = vector.broadcast %cst_187 : f32 to vector<4x16xf32>
    %345 = vector.extract_strided_slice %331 {offsets = [0, 0], sizes = [4, 240], strides = [1, 1]} : vector<4x256xf32> to vector<4x240xf32>
    %346 = tpu.concatenate %344, %345 in 1 : vector<4x16xf32>, vector<4x240xf32> -> vector<4x256xf32>
    %c1_188 = arith.constant 1 : index
    %c0_189 = arith.constant 0 : index
    %c0_190 = arith.constant 0 : index
    %347 = vector.load %arg15[%c1_188, %c0_189, %c0_190] : memref<9x4x4xf32, #tpu.memory_space<vmem>>, vector<1x4x4xf32>
    %348 = vector.shape_cast %347 : vector<1x4x4xf32> to vector<4x4xf32>
    %cst_191 = arith.constant dense<0.000000e+00> : vector<4x256xf32>
    %349 = tpu.matmul %348, %346, %cst_191 {dimension_numbers = #tpu.dot_dimension_numbers<[1], [0], [0], [1], [0, 0, 1, 1], [], []>} : vector<4x4xf32>, vector<4x256xf32>, vector<4x256xf32> -> vector<4x256xf32>
    %350 = arith.addf %343, %349 : vector<4x256xf32>
    %cst_192 = arith.constant 0.000000e+00 : f32
    %351 = vector.broadcast %cst_192 : f32 to vector<4x15xf32>
    %352 = vector.extract_strided_slice %335 {offsets = [0, 0], sizes = [4, 241], strides = [1, 1]} : vector<4x256xf32> to vector<4x241xf32>
    %353 = tpu.concatenate %351, %352 in 1 : vector<4x15xf32>, vector<4x241xf32> -> vector<4x256xf32>
    %c2_193 = arith.constant 2 : index
    %c0_194 = arith.constant 0 : index
    %c0_195 = arith.constant 0 : index
    %354 = vector.load %arg15[%c2_193, %c0_194, %c0_195] : memref<9x4x4xf32, #tpu.memory_space<vmem>>, vector<1x4x4xf32>
    %355 = vector.shape_cast %354 : vector<1x4x4xf32> to vector<4x4xf32>
    %cst_196 = arith.constant dense<0.000000e+00> : vector<4x256xf32>
    %356 = tpu.matmul %355, %353, %cst_196 {dimension_numbers = #tpu.dot_dimension_numbers<[1], [0], [0], [1], [0, 0, 1, 1], [], []>} : vector<4x4xf32>, vector<4x256xf32>, vector<4x256xf32> -> vector<4x256xf32>
    %357 = arith.addf %350, %356 : vector<4x256xf32>
    %cst_197 = arith.constant 0.000000e+00 : f32
    %358 = vector.broadcast %cst_197 : f32 to vector<4x1xf32>
    %359 = vector.extract_strided_slice %333 {offsets = [0, 0], sizes = [4, 255], strides = [1, 1]} : vector<4x256xf32> to vector<4x255xf32>
    %360 = tpu.concatenate %358, %359 in 1 : vector<4x1xf32>, vector<4x255xf32> -> vector<4x256xf32>
    %c3_198 = arith.constant 3 : index
    %c0_199 = arith.constant 0 : index
    %c0_200 = arith.constant 0 : index
    %361 = vector.load %arg15[%c3_198, %c0_199, %c0_200] : memref<9x4x4xf32, #tpu.memory_space<vmem>>, vector<1x4x4xf32>
    %362 = vector.shape_cast %361 : vector<1x4x4xf32> to vector<4x4xf32>
    %cst_201 = arith.constant dense<0.000000e+00> : vector<4x256xf32>
    %363 = tpu.matmul %362, %360, %cst_201 {dimension_numbers = #tpu.dot_dimension_numbers<[1], [0], [0], [1], [0, 0, 1, 1], [], []>} : vector<4x4xf32>, vector<4x256xf32>, vector<4x256xf32> -> vector<4x256xf32>
    %364 = arith.addf %357, %363 : vector<4x256xf32>
    %c4_202 = arith.constant 4 : index
    %c0_203 = arith.constant 0 : index
    %c0_204 = arith.constant 0 : index
    %365 = vector.load %arg15[%c4_202, %c0_203, %c0_204] : memref<9x4x4xf32, #tpu.memory_space<vmem>>, vector<1x4x4xf32>
    %366 = vector.shape_cast %365 : vector<1x4x4xf32> to vector<4x4xf32>
    %cst_205 = arith.constant dense<0.000000e+00> : vector<4x256xf32>
    %367 = tpu.matmul %366, %331, %cst_205 {dimension_numbers = #tpu.dot_dimension_numbers<[1], [0], [0], [1], [0, 0, 1, 1], [], []>} : vector<4x4xf32>, vector<4x256xf32>, vector<4x256xf32> -> vector<4x256xf32>
    %368 = arith.addf %364, %367 : vector<4x256xf32>
    %cst_206 = arith.constant 0.000000e+00 : f32
    %369 = vector.broadcast %cst_206 : f32 to vector<4x1xf32>
    %370 = vector.extract_strided_slice %335 {offsets = [0, 1], sizes = [4, 255], strides = [1, 1]} : vector<4x256xf32> to vector<4x255xf32>
    %371 = tpu.concatenate %370, %369 in 1 : vector<4x255xf32>, vector<4x1xf32> -> vector<4x256xf32>
    %c5_207 = arith.constant 5 : index
    %c0_208 = arith.constant 0 : index
    %c0_209 = arith.constant 0 : index
    %372 = vector.load %arg15[%c5_207, %c0_208, %c0_209] : memref<9x4x4xf32, #tpu.memory_space<vmem>>, vector<1x4x4xf32>
    %373 = vector.shape_cast %372 : vector<1x4x4xf32> to vector<4x4xf32>
    %cst_210 = arith.constant dense<0.000000e+00> : vector<4x256xf32>
    %374 = tpu.matmul %373, %371, %cst_210 {dimension_numbers = #tpu.dot_dimension_numbers<[1], [0], [0], [1], [0, 0, 1, 1], [], []>} : vector<4x4xf32>, vector<4x256xf32>, vector<4x256xf32> -> vector<4x256xf32>
    %375 = arith.addf %368, %374 : vector<4x256xf32>
    %cst_211 = arith.constant 0.000000e+00 : f32
    %376 = vector.broadcast %cst_211 : f32 to vector<4x15xf32>
    %377 = vector.extract_strided_slice %333 {offsets = [0, 15], sizes = [4, 241], strides = [1, 1]} : vector<4x256xf32> to vector<4x241xf32>
    %378 = tpu.concatenate %377, %376 in 1 : vector<4x241xf32>, vector<4x15xf32> -> vector<4x256xf32>
    %c6_212 = arith.constant 6 : index
    %c0_213 = arith.constant 0 : index
    %c0_214 = arith.constant 0 : index
    %379 = vector.load %arg15[%c6_212, %c0_213, %c0_214] : memref<9x4x4xf32, #tpu.memory_space<vmem>>, vector<1x4x4xf32>
    %380 = vector.shape_cast %379 : vector<1x4x4xf32> to vector<4x4xf32>
    %cst_215 = arith.constant dense<0.000000e+00> : vector<4x256xf32>
    %381 = tpu.matmul %380, %378, %cst_215 {dimension_numbers = #tpu.dot_dimension_numbers<[1], [0], [0], [1], [0, 0, 1, 1], [], []>} : vector<4x4xf32>, vector<4x256xf32>, vector<4x256xf32> -> vector<4x256xf32>
    %382 = arith.addf %375, %381 : vector<4x256xf32>
    %cst_216 = arith.constant 0.000000e+00 : f32
    %383 = vector.broadcast %cst_216 : f32 to vector<4x16xf32>
    %384 = vector.extract_strided_slice %331 {offsets = [0, 16], sizes = [4, 240], strides = [1, 1]} : vector<4x256xf32> to vector<4x240xf32>
    %385 = tpu.concatenate %384, %383 in 1 : vector<4x240xf32>, vector<4x16xf32> -> vector<4x256xf32>
    %c7_217 = arith.constant 7 : index
    %c0_218 = arith.constant 0 : index
    %c0_219 = arith.constant 0 : index
    %386 = vector.load %arg15[%c7_217, %c0_218, %c0_219] : memref<9x4x4xf32, #tpu.memory_space<vmem>>, vector<1x4x4xf32>
    %387 = vector.shape_cast %386 : vector<1x4x4xf32> to vector<4x4xf32>
    %cst_220 = arith.constant dense<0.000000e+00> : vector<4x256xf32>
    %388 = tpu.matmul %387, %385, %cst_220 {dimension_numbers = #tpu.dot_dimension_numbers<[1], [0], [0], [1], [0, 0, 1, 1], [], []>} : vector<4x4xf32>, vector<4x256xf32>, vector<4x256xf32> -> vector<4x256xf32>
    %389 = arith.addf %382, %388 : vector<4x256xf32>
    %cst_221 = arith.constant 0.000000e+00 : f32
    %390 = vector.broadcast %cst_221 : f32 to vector<4x17xf32>
    %391 = vector.extract_strided_slice %335 {offsets = [0, 17], sizes = [4, 239], strides = [1, 1]} : vector<4x256xf32> to vector<4x239xf32>
    %392 = tpu.concatenate %391, %390 in 1 : vector<4x239xf32>, vector<4x17xf32> -> vector<4x256xf32>
    %c8_222 = arith.constant 8 : index
    %c0_223 = arith.constant 0 : index
    %c0_224 = arith.constant 0 : index
    %393 = vector.load %arg15[%c8_222, %c0_223, %c0_224] : memref<9x4x4xf32, #tpu.memory_space<vmem>>, vector<1x4x4xf32>
    %394 = vector.shape_cast %393 : vector<1x4x4xf32> to vector<4x4xf32>
    %cst_225 = arith.constant dense<0.000000e+00> : vector<4x256xf32>
    %395 = tpu.matmul %394, %392, %cst_225 {dimension_numbers = #tpu.dot_dimension_numbers<[1], [0], [0], [1], [0, 0, 1, 1], [], []>} : vector<4x4xf32>, vector<4x256xf32>, vector<4x256xf32> -> vector<4x256xf32>
    %396 = arith.addf %389, %395 : vector<4x256xf32>
    %397 = vector.shape_cast %396 : vector<4x256xf32> to vector<1x4x256xf32>
    %cst_226 = arith.constant dense<0.000000e+00> : vector<1xf32>
    %398 = vector.multi_reduction <add>, %397, %cst_226 [1, 2] : vector<1x4x256xf32> to vector<1xf32>
    %399 = vector.shape_cast %398 : vector<1xf32> to vector<1x1x1xf32>
    %400 = vector.extract %399[0, 0, 0] : f32 from vector<1x1x1xf32>
    %cst_227 = arith.constant 9.765625E-4 : f32
    %401 = arith.mulf %400, %cst_227 : f32
    %402 = arith.mulf %396, %396 : vector<4x256xf32>
    %403 = vector.shape_cast %402 : vector<4x256xf32> to vector<1x4x256xf32>
    %cst_228 = arith.constant dense<0.000000e+00> : vector<1xf32>
    %404 = vector.multi_reduction <add>, %403, %cst_228 [1, 2] : vector<1x4x256xf32> to vector<1xf32>
    %405 = vector.shape_cast %404 : vector<1xf32> to vector<1x1x1xf32>
    %406 = vector.extract %405[0, 0, 0] : f32 from vector<1x1x1xf32>
    %cst_229 = arith.constant 9.765625E-4 : f32
    %407 = arith.mulf %406, %cst_229 : f32
    %408 = arith.mulf %401, %401 : f32
    %409 = arith.subf %407, %408 : f32
    %cst_230 = arith.constant 0.000000e+00 : f32
    %410 = arith.maximumf %409, %cst_230 : f32
    %cst_231 = arith.constant 9.99999974E-6 : f32
    %411 = arith.addf %410, %cst_231 : f32
    %412 = math.rsqrt %411 : f32
    %c0_232 = arith.constant 0 : index
    %c0_233 = arith.constant 0 : index
    %413 = vector.load %arg16[%c0_232, %c0_233] : memref<4x1xf32, #tpu.memory_space<vmem>>, vector<4x1xf32>
    %414 = vector.broadcast %412 : f32 to vector<4x1xf32>
    %415 = arith.mulf %413, %414 : vector<4x1xf32>
    %c0_234 = arith.constant 0 : index
    %c0_235 = arith.constant 0 : index
    %416 = vector.load %arg17[%c0_234, %c0_235] : memref<4x1xf32, #tpu.memory_space<vmem>>, vector<4x1xf32>
    %417 = vector.broadcast %401 : f32 to vector<4x1xf32>
    %418 = arith.mulf %417, %415 : vector<4x1xf32>
    %419 = arith.subf %416, %418 : vector<4x1xf32>
    %420 = vector.broadcast %415 : vector<4x1xf32> to vector<4x256xf32>
    %421 = arith.mulf %396, %420 : vector<4x256xf32>
    %422 = vector.broadcast %419 : vector<4x1xf32> to vector<4x256xf32>
    %423 = arith.addf %421, %422 : vector<4x256xf32>
    %c0_236 = arith.constant 0 : index
    %c0_237 = arith.constant 0 : index
    %c0_238 = arith.constant 0 : index
    %424 = vector.load %arg18[%c0_236, %c0_237, %c0_238] : memref<1x4x256xf32, #tpu.memory_space<vmem>>, vector<1x4x256xf32>
    %425 = vector.shape_cast %424 : vector<1x4x256xf32> to vector<4x256xf32>
    %426 = vector.shape_cast %423 : vector<4x256xf32> to vector<1x4x256xf32>
    tpu.vector_store %arg18[%c0_236, %c0_237, %c0_238], %426 {strides = array<i32>} : memref<1x4x256xf32, #tpu.memory_space<vmem>>, vector<1x4x256xf32>,
    return
  }
  func.func @transform_0(%arg0: i32) -> (i32, i32, i32) {
    %c0_i32 = arith.constant 0 : i32
    %c0_i32_0 = arith.constant 0 : i32
    %c0_i32_1 = arith.constant 0 : i32
    return %arg0, %c0_i32, %c0_i32_0 : i32, i32, i32
  }
  func.func @transform_1(%arg0: i32) -> (i32, i32, i32) {
    %c0_i32 = arith.constant 0 : i32
    %c0_i32_0 = arith.constant 0 : i32
    %c0_i32_1 = arith.constant 0 : i32
    return %arg0, %c0_i32, %c0_i32_0 : i32, i32, i32
  }
  func.func @transform_2(%arg0: i32) -> (i32, i32) {
    %c0_i32 = arith.constant 0 : i32
    %c0_i32_0 = arith.constant 0 : i32
    %c0_i32_1 = arith.constant 0 : i32
    return %c0_i32, %c0_i32_0 : i32, i32
  }
  func.func @transform_3(%arg0: i32) -> (i32, i32) {
    %c0_i32 = arith.constant 0 : i32
    %c0_i32_0 = arith.constant 0 : i32
    %c0_i32_1 = arith.constant 0 : i32
    return %c0_i32, %c0_i32_0 : i32, i32
  }
  func.func @transform_4(%arg0: i32) -> (i32, i32) {
    %c0_i32 = arith.constant 0 : i32
    %c0_i32_0 = arith.constant 0 : i32
    %c0_i32_1 = arith.constant 0 : i32
    return %c0_i32, %c0_i32_0 : i32, i32
  }
  func.func @transform_5(%arg0: i32) -> (i32, i32, i32) {
    %c0_i32 = arith.constant 0 : i32
    %c0_i32_0 = arith.constant 0 : i32
    %c0_i32_1 = arith.constant 0 : i32
    %c0_i32_2 = arith.constant 0 : i32
    return %c0_i32, %c0_i32_0, %c0_i32_1 : i32, i32, i32
  }
  func.func @transform_6(%arg0: i32) -> (i32, i32) {
    %c0_i32 = arith.constant 0 : i32
    %c0_i32_0 = arith.constant 0 : i32
    %c0_i32_1 = arith.constant 0 : i32
    return %c0_i32, %c0_i32_0 : i32, i32
  }
  func.func @transform_7(%arg0: i32) -> (i32, i32) {
    %c0_i32 = arith.constant 0 : i32
    %c0_i32_0 = arith.constant 0 : i32
    %c0_i32_1 = arith.constant 0 : i32
    return %c0_i32, %c0_i32_0 : i32, i32
  }
  func.func @transform_8(%arg0: i32) -> (i32, i32, i32) {
    %c0_i32 = arith.constant 0 : i32
    %c0_i32_0 = arith.constant 0 : i32
    %c0_i32_1 = arith.constant 0 : i32
    %c0_i32_2 = arith.constant 0 : i32
    return %c0_i32, %c0_i32_0, %c0_i32_1 : i32, i32, i32
  }
  func.func @transform_9(%arg0: i32) -> (i32, i32) {
    %c0_i32 = arith.constant 0 : i32
    %c0_i32_0 = arith.constant 0 : i32
    %c0_i32_1 = arith.constant 0 : i32
    return %c0_i32, %c0_i32_0 : i32, i32
  }
  func.func @transform_10(%arg0: i32) -> (i32, i32) {
    %c0_i32 = arith.constant 0 : i32
    %c0_i32_0 = arith.constant 0 : i32
    %c0_i32_1 = arith.constant 0 : i32
    return %c0_i32, %c0_i32_0 : i32, i32
  }
  func.func @transform_11(%arg0: i32) -> (i32, i32, i32) {
    %c0_i32 = arith.constant 0 : i32
    %c0_i32_0 = arith.constant 0 : i32
    %c0_i32_1 = arith.constant 0 : i32
    %c0_i32_2 = arith.constant 0 : i32
    return %c0_i32, %c0_i32_0, %c0_i32_1 : i32, i32, i32
  }
  func.func @transform_12(%arg0: i32) -> (i32, i32) {
    %c0_i32 = arith.constant 0 : i32
    %c0_i32_0 = arith.constant 0 : i32
    %c0_i32_1 = arith.constant 0 : i32
    return %c0_i32, %c0_i32_0 : i32, i32
  }
  func.func @transform_13(%arg0: i32) -> (i32, i32) {
    %c0_i32 = arith.constant 0 : i32
    %c0_i32_0 = arith.constant 0 : i32
    %c0_i32_1 = arith.constant 0 : i32
    return %c0_i32, %c0_i32_0 : i32, i32
  }
  func.func @transform_14(%arg0: i32) -> (i32, i32, i32) {
    %c0_i32 = arith.constant 0 : i32
    %c0_i32_0 = arith.constant 0 : i32
    %c0_i32_1 = arith.constant 0 : i32
    %c0_i32_2 = arith.constant 0 : i32
    return %c0_i32, %c0_i32_0, %c0_i32_1 : i32, i32, i32
  }
  func.func @transform_15(%arg0: i32) -> (i32, i32) {
    %c0_i32 = arith.constant 0 : i32
    %c0_i32_0 = arith.constant 0 : i32
    %c0_i32_1 = arith.constant 0 : i32
    return %c0_i32, %c0_i32_0 : i32, i32
  }
  func.func @transform_16(%arg0: i32) -> (i32, i32) {
    %c0_i32 = arith.constant 0 : i32
    %c0_i32_0 = arith.constant 0 : i32
    %c0_i32_1 = arith.constant 0 : i32
    return %c0_i32, %c0_i32_0 : i32, i32
  }
  func.func @transform_17(%arg0: i32) -> (i32, i32, i32) {
    %c0_i32 = arith.constant 0 : i32
    %c0_i32_0 = arith.constant 0 : i32
    %c0_i32_1 = arith.constant 0 : i32
    return %arg0, %c0_i32, %c0_i32_0 : i32, i32, i32
  }
}

</mosaic_0001>

<bundles_post_ra>
// kernel: tpu_custom_call.1
= control target key start
LH: loop header
LB: loop body
LE: loop exit
PB: predicated region body
PF: predicated region fallthrough
CT: control target
= control target key end

     0   :  { %s4424_s0 = inlined_call_operand.vmem [shape: f32[2,32,8], index: 0, kind: input, shape index: {}]   ;;  %s4425_s1 = inlined_call_operand.vmem [shape: f32[2,4,256], index: 1, kind: input, shape index: {}]   ;;  %s4426_s2 = inlined_call_operand.vmem [shape: f32[8,16], index: 2, kind: input, shape index: {}]   ;;  %s4427_s3 = inlined_call_operand.vmem [shape: f32[16,8], index: 3, kind: input, shape index: {}]   ;;  %s4428_s4 = inlined_call_operand.vmem [shape: f32[2,256], index: 4, kind: input, shape index: {}]   ;;  %s4429_s5 = inlined_call_operand.vmem [shape: f32[9,8,8], index: 5, kind: input, shape index: {}]   ;;  %s4430_s6 = inlined_call_operand.vmem [shape: f32[8,1], index: 6, kind: input, shape index: {}]   ;;  %s4431_s7 = inlined_call_operand.vmem [shape: f32[8,1], index: 7, kind: input, shape index: {}]   ;;  %s4432_s8 = inlined_call_operand.vmem [shape: f32[9,8,8], index: 8, kind: input, shape index: {}]   ;;  %s4433_s9 = inlined_call_operand.vmem [shape: f32[8,1], index: 9, kind: input, shape index: {}]   ;;  %s4434_s10 = inlined_call_operand.vmem [shape: f32[8,1], index: 10, kind: input, shape index: {}]   ;;  %s4435_s11 = inlined_call_operand.vmem [shape: f32[9,4,8], index: 11, kind: input, shape index: {}]   ;;  %s4436_s12 = inlined_call_operand.vmem [shape: f32[4,1], index: 12, kind: input, shape index: {}]   ;;  %s4437_s13 = inlined_call_operand.vmem [shape: f32[4,1], index: 13, kind: input, shape index: {}]   ;;  %s4438_s14 = inlined_call_operand.vmem [shape: f32[9,4,4], index: 14, kind: input, shape index: {}]   ;;  %s4439_s15 = inlined_call_operand.vmem [shape: f32[4,1], index: 15, kind: input, shape index: {}]   ;;  %s4440_s16 = inlined_call_operand.vmem [shape: f32[4,1], index: 16, kind: input, shape index: {}]   ;;  %s4441_s17 = inlined_call_operand.hbm [shape: f32[2,4,256], index: 17, kind: output, shape index: {}]  }
   0x1   :  { %4469 = sst [smem:[#allocation12_spill]] %s4424_s0 }
   0x2   :  { %4470 = sst [smem:[#allocation13_spill]] %s4425_s1 }
   0x3   :  { %4471 = sst [smem:[#allocation14_spill]] %s4426_s2 }
   0x4   :  { %4472 = sst [smem:[#allocation15_spill]] %s4427_s3 }
   0x5   :  { %4473 = sst [smem:[#allocation16_spill]] %s4428_s4 }
   0x6   :  { %4474 = sst [smem:[#allocation17_spill]] %s4429_s5 }
   0x7   :  { %4475 = sst [smem:[#allocation18_spill]] %s4430_s6 }
   0x8   :  { %22 = vsyncpa [#allocation3], 0 }
   0x9   :  { %24 = vsyncpa [#allocation3 + $0x1], 0  ;;  %s3808_s24 = smov 0   ;;  %s3810_s25 = smov 0  }
   0xa   :  { %s3812_s26 = smov 0   ;;  %s3814_s27 = smov 0  }
   0xb LB: > { %4476 = sst [smem:[#allocation5_spill]] %s3687_s24  ;;  %s3829_s28 = sadd.s32 4294967295, %s3699_s27   ;;  %s3699_s27 = sphi %s3814_s27, %s4537_s27   ;;  %s3695_s26 = sphi %s3812_s26, %s4539_s26   ;;  %s3691_s25 = sphi %s3810_s25, %s4541_s25   ;;  %s3687_s24 = sphi %s3808_s24, %s4540_s24  }
   0xc   : > { %4477 = sst [smem:[#allocation6_spill]] %s3695_s26  ;;  %s3347_s29 = sadd.s32 4294967294, %s3699_s27  }
   0xd   : > { %4478 = sst [smem:[#allocation7_spill]] %s3699_s27  ;;  %s3833_s0 = sadd.s32 1, %s3699_s27  }
   0xe   : > { %4479 = sst [smem:[#allocation8_spill]] %s3833_s0  ;;  %s404_s30 = sadd.s32 1, %s3695_s26 }
   0xf   : > { %s401_s18 = ssub.s32 %s3699_s27, %s3833_s0  ;;  %p414_p0 = scmp.ne.s32.totalorder %s3695_s26, %s3691_s25 }
  0x10   : > { %p402_p1 = scmp.eq.s32.totalorder %s401_s18, 0  ;;  %p415_p2 = scmp.eq.s32.totalorder %s3829_s28, 1 }
  0x11   : > { %p420_p3 = scmp.ne.s32.totalorder %s3691_s25, %s3687_s24  ;;  %p421_p4 = scmp.eq.s32.totalorder %s3347_s29, 1 }
  0x12   : > { %s3844_s19 = scalar_select %p402_p1, %s3695_s26, %s404_s30  }
  0x13   : > { %p3846_p5 = por %p415_p2, %p414_p0  ;;  %p3850_p6 = por %p421_p4, %p420_p3 }
  0x14   : > { %4480 = sst [smem:[#allocation9_spill]] %s3844_s19  ;;  %p3350_p7 = scmp.ge.s32.totalorder %s3699_s27, 1 }
  0x15   : > { %s4481_s1 = scalar_select %p3846_p5, 1, 0 }
  0x16   : > { %s4483_s20 = scalar_select %p3850_p6, 1, 0 }
  0x17   : > { %4482 = sst [smem:[#allocation10_spill]] %s4481_s1  ;;  %p500_p8 = scmp.lt.s32.totalorder %s3699_s27, 3 }
  0x18   : > { %4484 = sst [smem:[#allocation11_spill]] %s4483_s20 }
  0x19   : > { %p501_p9 = pnand %p3350_p7, %p500_p8 }
  0x1a   : > { %s4485_s2 = sld [smem:[#allocation14_spill]] (!%p501_p9)  ;;  %p557_p10 = scmp.lt.s32.totalorder (!%p501_p9), %s3829_s28, 1 }
  0x1b   : > { %504 = sbr.rel (%p501_p9) target bundleno = 3209 (0xc89), region = 88  ;;  %s4486_s26 = sld [smem:[#allocation12_spill]] (!%p501_p9) }
  0x1c   : > { %s4487_s27 = sld [smem:[#allocation13_spill]] (!%p501_p9)  ;;  %s3705_s20 = smov (!%p501_p9), 48  }
  0x1d   : > { %s4488_s3 = sld [smem:[#allocation15_spill]] (!%p501_p9)  ;;  %s3706_s21 = smov (!%p501_p9), 32  }
  0x1e   : > { %s4465_s22 = smov (!%p501_p9), 16   ;;  %s4489_s4 = sld [smem:[#allocation16_spill]] (!%p501_p9) }
  0x1f   : > { %s4461_s19 = smov (!%p501_p9), 17   ;;  %s4450_s24 = smov (!%p501_p9), 1  }
  0x20   : > { %v568_v0 = vld [vmem:[%s4485_s2] sm:$0xff]  ;;  %s558_s23 = scalar_select %p557_p10, %s3829_s28, 1  ;;  %vm575_vm0 = vcmask 64512   ;;  %v3701_v15 = vmov 1983009808   ;;  %vm716_vm1 = vcmask 1047556  }
  0x21   : > { %603 = vmatpush.msra.mxu0 %v568_v0  ;;  %v721_v16 = vunpack.c.l.s4 %v3701_v15  ;;  %v3702_v20 = vmov 1934713408   ;;  %vm884_vm2 = vcmask 130048   ;;  %vm886_vm3 = vcmask 261120   ;;  %s4492_s5 = sld [smem:[#allocation17_spill]]  ;;  %s4504_s2 = smov 16  }
  0x22   : > { %s3531_s29 = sshll.u32 %s558_s23, 5  ;;  %s3532_s30 = sshll.u32 %s558_s23, 3  ;;  %v745_v21 = vunpack.c.l.s4 %v3702_v20  ;;  %vm888_vm4 = vcmask 392192   ;;  %vm890_vm5 = vcmask 523264   ;;  %vm892_vm6 = vcmask 654336   ;;  %vm3981_vm10 = vmneg %vm884_vm2 }
  0x23   : > { %s561_s0 = scalar_lea.vmem %s4486_s26, %s3531_s29  ;;  %s566_s1 = scalar_lea.vmem %s4487_s27, %s3532_s30  ;;  %v569_v6 = vld [vmem:[%s4488_s3] sm:$0xff]  ;;  %v570_v8 = vld [vmem:[%s4488_s3 + $0x8] sm:$0xff]  ;;  %v722_v17 = vunpack.c.0.s8 %v721_v16  ;;  %vm896_vm7 = vcmask 916480   ;;  %vm894_vm8 = vcmask 785408   ;;  %vm4458_vm9 = vcmask 1043456  }
  0x24   : > { %v571_v1 = vld [vmem:[%s561_s0] sm:$0xff]  ;;  %v572_v3 = vld [vmem:[%s561_s0 + $0x8] sm:$0xff]  ;;  %v573_v4 = vld [vmem:[%s561_s0 + $0x10] sm:$0xff]  ;;  %v3888_v30 = vunpack.c.0.s8 %v745_v21  ;;  %s3708_s23 = smov 80   ;;  %s4452_s29 = smov 112   ;;  %vm944_vm11 = vcmask 138240  }
  0x25   : > { %v905_v2 = vld [vmem:[%s566_s1] sm:$0xff]  ;;  %3356 = vmatmul.msk.f32.vlgmr.msra.gmra.mxu0 %vm575_vm0, %v571_v1  ;;  %v574_v5 = vld [vmem:[%s561_s0 + $0x18] sm:$0xff]  ;;  %s3703_s0 = smov 96   ;;  %s3704_s1 = smov 64   ;;  %vm1110_vm12 = vcmask 7168   ;;  %vm3993_vm13 = vmneg %vm944_vm11  ;;  %vm1054_vm15 = vcmask 121856  }
  0x26   : > { %907 = vst [vmem:[#allocation1] ss:$2 sm:$0xff] %v905_v2  ;;  %s4456_s26 = smov 15   ;;  %s4463_s27 = smov 127   ;;  %vm3999_vm14 = vmneg %vm1110_vm12 }
  0x27   : > { %s4499_s6 = sld [smem:[#allocation18_spill]]  ;;  %s4512_s3 = smov 0.0  }
  0x2d   : > { %3357 = vmatmul.msk.f32.gmra.mxu0 %vm575_vm0, %v572_v3 }
  0x35   : > { %3358 = vmatmul.msk.f32.gmra.mxu0 %vm575_vm0, %v573_v4 }
  0x3d   : > { %3359 = vmatmul.msk.f32.gmra.mxu0 %vm575_vm0, %v574_v5 }
  0xa2   : > { %v605_v7 = vpop.f32.mrf.mxu0 }
  0xa3   : > { %638 = vmatpush.msra.mxu1 %v605_v7 }
  0xa4   : > { %3360 = vmatmul.msk.f32.vlgmr.msra.gmra.mxu1 %vm575_vm0, %v569_v6 }
  0xaa   : > { %v608_v9 = vpop.f32.mrf.mxu0 }
  0xab   : > { %661 = vmatpush.msra.mxu2 %v608_v9 }
  0xac   : > { %3361 = vmatmul.msk.f32.gmra.mxu1 %vm575_vm0, %v570_v8  ;;  %3362 = vmatmul.msk.f32.vlgmr.msra.gmra.mxu2 %vm575_vm0, %v569_v6 }
  0xb2   : > { %v611_v10 = vpop.f32.mrf.mxu0 }
  0xb3   : > { %684 = vmatpush.msra.mxu3 %v611_v10 }
  0xb4   : > { %3364 = vmatmul.msk.f32.vlgmr.msra.gmra.mxu3 %vm575_vm0, %v569_v6  ;;  %3363 = vmatmul.msk.f32.gmra.mxu2 %vm575_vm0, %v570_v8 }
  0xba   : > { %v614_v11 = vpop.f32.mrf.mxu0 }
  0xbb   : > { %707 = vmatpush.msrb.mxu1 %v614_v11 }
  0xbc   : > { %3365 = vmatmul.msk.f32.gmra.mxu3 %vm575_vm0, %v570_v8  ;;  %3366 = vmatmul.msk.f32.vlgmr.msrb.gmra.mxu1 %vm575_vm0, %v569_v6 }
  0xc4   : > { %3367 = vmatmul.msk.f32.gmra.mxu1 %vm575_vm0, %v570_v8 }
 0x121   : > { %v640_v12 = vpop.f32.mrf.mxu1 }
 0x122   : > { %v718_v18 = vrot.slane %v640_v12, 4 }
 0x129   : > { %v643_v13 = vpop.f32.mrf.mxu1 }
 0x12a   : > { %v774_v46 = vrot.slane %v643_v13, 4 }
 0x12f   : > { %v663_v14 = vpop.f32.mrf.mxu2 }
 0x130   : > { %v730_v19 = vrot.slane %v663_v14, 4 }
 0x137   : > { %v686_v22 = vpop.f32.mrf.mxu3  ;;  %v666_v34 = vpop.f32.mrf.mxu2 }
 0x138   : > { %v715_v23 = vrot.slane %v686_v22, 4  ;;  %v719_v24 = vsel %vm716_vm1, %v686_v22, %v718_v18  ;;  %v786_v40 = vrot.slane %v666_v34, 4 }
 0x139   : > { %v727_v25 = vperm.slane %v719_v24, %v722_v17  ;;  %v709_v26 = vpop.f32.mrf.mxu1 }
 0x13a   : > { %v717_v27 = vsel %vm716_vm1, %v715_v23, %v640_v12  ;;  %v728_v28 = vrot.slane %v709_v26, 4  ;;  %v731_v29 = vsel %vm716_vm1, %v709_v26, %v730_v19 }
 0x13b   : > { %v723_v31 = vperm.slane %v717_v27, %v722_v17  ;;  %v754_v32 = vrot.slane %v727_v25, 4  ;;  %v739_v33 = vperm.slane %v731_v29, %v722_v17 }
 0x13c   : > { %v729_v35 = vsel %vm716_vm1, %v728_v28, %v663_v14 }
 0x13d   : > { %v742_v36 = vrot.slane %v723_v31, 4  ;;  %v735_v37 = vperm.slane %v729_v35, %v722_v17  ;;  %v752_v38 = vrot.slane %v739_v33, 4  ;;  %v755_v39 = vsel %vm716_vm1, %v739_v33, %v754_v32 }
 0x13e   : > { %v3893_v41 = vperm.slane %v755_v39, %v3888_v30 }
 0x13f   : > { %v740_v42 = vrot.slane %v735_v37, 4  ;;  %v689_v43 = vpop.f32.mrf.mxu3  ;;  %v753_v44 = vsel %vm716_vm1, %v752_v38, %v727_v25  ;;  %v743_v45 = vsel %vm716_vm1, %v735_v37, %v742_v36 }
 0x140   : > { %v772_v47 = vrot.slane %v689_v43, 4  ;;  %849 = vrot.lane.b32.xlu1 %v3893_v41, %s3703_s0  ;;  %v759_v48 = vperm.slane %v753_v44, %v3888_v30  ;;  %v751_v50 = vperm.slane %v743_v45, %v3888_v30  ;;  %v775_v53 = vsel %vm716_vm1, %v689_v43, %v774_v46  ;;  %v567_v45 = vld [vmem:[%s4489_s4] sm:$0xf] }
 0x141   : > { %v712_v49 = vpop.f32.mrf.mxu1  ;;  %v741_v51 = vsel %vm716_vm1, %v740_v42, %v723_v31  ;;  %v783_v61 = vperm.slane %v775_v53, %v722_v17  ;;  %v770_v23 = vrot.slane %v3893_v41, 4 }
 0x142   : > { %v773_v52 = vsel %vm716_vm1, %v772_v47, %v643_v13  ;;  %v784_v54 = vrot.slane %v712_v49, 4  ;;  %v787_v55 = vsel %vm716_vm1, %v712_v49, %v786_v40  ;;  %841 = vrot.lane.b32.xlu0 %v759_v48, %s3704_s1  ;;  %v766_v58 = vrot.slane %v751_v50, 4 }
 0x143   : > { %v779_v56 = vperm.slane %v773_v52, %v722_v17  ;;  %v795_v57 = vperm.slane %v787_v55, %v722_v17  ;;  %v747_v60 = vperm.slane %v741_v51, %v3888_v30  ;;  %v768_v4 = vrot.slane %v759_v48, 4  ;;  %v909_v52 = vld.sshfl [vmem:[#allocation1 + $0x8] sm:$0xff pattern:$0x75316420] }
 0x144   : > { %v785_v59 = vsel %vm716_vm1, %v784_v54, %v666_v34  ;;  %v767_v63 = vsel %vm716_vm1, 0.0, %v766_v58  ;;  %v810_v13 = vrot.slane %v783_v61, 4  ;;  %v771_v25 = vsel %vm716_vm1, 0.0, %v770_v23  ;;  %v3377_v23 = vld [vmem:[%s4492_s5 + $0x10] sm:$0xff] }
 0x145   : > { %v808_v62 = vrot.slane %v795_v57, 4  ;;  %v798_v0 = vrot.slane %v779_v56, 4  ;;  %v791_v1 = vperm.slane %v785_v59, %v722_v17  ;;  %837 = vrot.lane.b32.xlu2 %v767_v63, %s3705_s20  ;;  %v764_v2 = vrot.slane %v747_v60, 4 }
 0x146   : > { %v769_v9 = vsel %vm716_vm1, 0.0, %v768_v4  ;;  %v811_v17 = vsel %vm716_vm1, %v795_v57, %v810_v13  ;;  %v922_v49 = vperm.slane %v567_v45, 0  ;;  %v908_v57 = vld.sshfl [vmem:[#allocation1] sm:$0xff pattern:$0x75316420]  ;;  %v923_v63 = vperm.slane %v567_v45, 2 }
 0x147   : > { %v809_v3 = vsel %vm716_vm1, %v808_v62, %v783_v61  ;;  %v765_v5 = vsel %vm716_vm1, 0.0, %v764_v2  ;;  %v796_v7 = vrot.slane %v791_v1, 4  ;;  %v799_v8 = vsel %vm716_vm1, %v791_v1, %v798_v0 }
 0x148   : > { %833 = vrot.lane.b32.xlu1 %v751_v50, %s3706_s21  ;;  %v815_v6 = vperm.slane %v809_v3, %v3888_v30  ;;  %v807_v10 = vperm.slane %v799_v8, %v3888_v30  ;;  %v819_v20 = vperm.slane %v811_v17, %v3888_v30  ;;  %v3938_v59 = vperm.slane %v922_v49, 0  ;;  %v3466_v17 = vld [vmem:[%s4435_s11 + $0x14] sm:$0xf] }
 0x149   : > { %v797_v12 = vsel %vm716_vm1, %v796_v7, %v779_v56  ;;  %v931_v3 = vperm.slane %v567_v45, 3  ;;  %v3955_v4 = vperm.slane %v923_v63, 0 }
 0x14a   : > { %829 = vrot.lane.b32.xlu0 %v765_v5, %s4465_s22  ;;  %v824_v11 = vrot.slane %v815_v6, 4  ;;  %v822_v15 = vrot.slane %v807_v10, 4  ;;  %v803_v16 = vperm.slane %v797_v12, %v3888_v30  ;;  %v826_v22 = vrot.slane %v819_v20, 4 }
 0x14c   : > { %v825_v14 = vsel %vm716_vm1, 0.0, %v824_v11  ;;  %v823_v18 = vsel %vm716_vm1, 0.0, %v822_v15  ;;  %v820_v19 = vrot.slane %v803_v16, 4  ;;  %v827_v24 = vsel %vm716_vm1, 0.0, %v826_v22 }
 0x14d   : > { %845 = vrot.lane.b32.xlu2 %v769_v9, %s3708_s23 }
 0x14e   : > { %v821_v21 = vsel %vm716_vm1, 0.0, %v820_v19  ;;  %v949_v19 = vld [vmem:[%s4492_s5] sm:$0xff]  ;;  %vm4012_vm1 = vmneg %vm1054_vm15 }
 0x150   : > { %861 = vrot.lane.b32.xlu1 %v807_v10, %s3706_s21  ;;  %v3368_v10 = vld [vmem:[%s4492_s5 + $0x8] sm:$0xff] }
 0x152   : > { %873 = vrot.lane.b32.xlu0 %v825_v14, %s3708_s23 }
 0x155   : > { %865 = vrot.lane.b32.xlu2 %v823_v18, %s3705_s20 }
 0x158   : > { %869 = vrot.lane.b32.xlu1 %v815_v6, %s3704_s1  ;;  %v3959_v6 = vperm.slane %v931_v3, 1  ;;  %s4454_s1 = smov 111  }
 0x15a   : > { %857 = vrot.lane.b32.xlu0 %v821_v21, %s4465_s22  ;;  %v3463_v21 = vld [vmem:[%s4435_s11 + $0x10] sm:$0xf] }
 0x15d   : > { %877 = vrot.lane.b32.xlu2 %v819_v20, %s3703_s0  ;;  %s4459_s0 = smov 113  }
 0x160   : > { %881 = vrot.lane.b32.xlu1 %v827_v24, %s4452_s29 }
 0x162   : > { %853 = vrot.lane.b32.xlu0 %v771_v25, %s4452_s29 }
 0x19f   : > { %v838_v27 = vpop.permute.xlu2 %837 }
 0x1a7   : > { %v846_v31 = vpop.permute.xlu2 %845 }
 0x1af   : > { %v866_v35 = vpop.permute.xlu2 %865 }
 0x1b2   : > { %v850_v26 = vpop.permute.xlu1 %849 }
 0x1b4   : > { %v842_v28 = vpop.permute.xlu0 %841 }
 0x1b7   : > { %v878_v46 = vpop.permute.xlu2 %877 }
 0x1ba   : > { %v834_v29 = vpop.permute.xlu1 %833 }
 0x1bc   : > { %v830_v30 = vpop.permute.xlu0 %829 }
 0x1bd   : > { %v885_v34 = vsel %vm884_vm2, %v747_v60, %v830_v30  ;;  %v930_v60 = vperm.slane %v567_v45, 1 }
 0x1be   : > { %v887_v36 = vsel %vm886_vm3, %v885_v34, %v834_v29  ;;  %v3387_v29 = vld [vmem:[%s4492_s5 + $0x20] sm:$0xff] }
 0x1bf   : > { %v889_v38 = vsel %vm888_vm4, %v887_v36, %v838_v27  ;;  %v3952_v2 = vperm.slane %v930_v60, 1 }
 0x1c0   : > { %v891_v42 = vsel %vm890_vm5, %v889_v38, %v842_v28 }
 0x1c1   : > { %v893_v48 = vsel %vm892_vm6, %v891_v42, %v846_v31 }
 0x1c2   : > { %v862_v32 = vpop.permute.xlu1 %861  ;;  %v895_v55 = vsel %vm894_vm8, %v893_v48, %v850_v26  ;;  %v3382_v26 = vld [vmem:[%s4492_s5 + $0x18] sm:$0xff] }
 0x1c4   : > { %v874_v33 = vpop.permute.xlu0 %873 }
 0x1ca   : > { %v870_v37 = vpop.permute.xlu1 %869 }
 0x1cc   : > { %v858_v39 = vpop.permute.xlu0 %857 }
 0x1cd   : > { %v898_v40 = vsel %vm884_vm2, %v803_v16, %v858_v39  ;;  %v3453_v16 = vld [vmem:[%s4435_s11 + $0x8] sm:$0xf] }
 0x1ce   : > { %v899_v41 = vsel %vm886_vm3, %v898_v40, %v862_v32  ;;  %vm1213_vm3 = vcmask 1039360  }
 0x1cf   : > { %v900_v43 = vsel %vm888_vm4, %v899_v41, %v866_v35  ;;  %vm1269_vm4 = vcmask 924672   ;;  %v3398_v41 = vld [vmem:[%s4492_s5 + $0x38] sm:$0xff] }
 0x1d0   : > { %v901_v44 = vsel %vm890_vm5, %v900_v43, %v870_v37  ;;  %vm1380_vm5 = vcmask 908288   ;;  %v3394_v37 = vld [vmem:[%s4492_s5 + $0x30] sm:$0xff] }
 0x1d1   : > { %v902_v47 = vsel %vm892_vm6, %v901_v44, %v874_v33  ;;  %v3390_v33 = vld [vmem:[%s4492_s5 + $0x28] sm:$0xff]  ;;  %v3402_v44 = vld [vmem:[%s4492_s5 + $0x40] sm:$0xff] }
 0x1d2   : > { %v882_v50 = vpop.permute.xlu1 %881  ;;  %v903_v51 = vsel %vm894_vm8, %v902_v47, %v878_v46 }
 0x1d3   : > { %v904_v53 = vsel %vm896_vm7, %v903_v51, %v882_v50 }
 0x1d4   : > { %v915_v54 = vrot.slane %v904_v53, 4  ;;  %v854_v56 = vpop.permute.xlu0 %853 }
 0x1d5   : > { %v897_v58 = vsel %vm896_vm7, %v895_v55, %v854_v56 }
 0x1d6   : > { %v3941_v61 = vsel %vm4458_vm9, %v909_v52, %v915_v54  ;;  %v914_v62 = vrot.slane %v897_v58, 4 }
 0x1d7   : > { %954 = vrot.lane.b32.xlu0 %v3941_v61, %s4465_s22  ;;  %v929_v7 = vmul.f32 %v3955_v4, %v3941_v61  ;;  %v937_v8 = vmul.f32 %v3959_v6, %v3941_v61 }
 0x1d8   : > { %v3946_v0 = vsel %vm4458_vm9, %v908_v57, %v914_v62 }
 0x1d9   : > { %952 = vrot.lane.b32.xlu2 %v3946_v0, %s4465_s22  ;;  %v928_v1 = vmul.f32 %v3938_v59, %v3946_v0  ;;  %v936_v5 = vmul.f32 %v3952_v2, %v3946_v0 }
 0x1db   : > { %940 = vrot.lane.b32.xlu1 %v928_v1, %s4461_s19 }
 0x1df   : > { %1050 = vrot.lane.b32.xlu0 %v936_v5, %s4456_s26 }
 0x1e1   : > { %942 = vrot.lane.b32.xlu2 %v929_v7, %s4461_s19 }
 0x1e3   : > { %1052 = vrot.lane.b32.xlu1 %v937_v8, %s4456_s26 }
 0x1e7   : > { %1108 = vrot.lane.b32.xlu0 %v929_v7, %s4450_s24 }
 0x1e9   : > { %1106 = vrot.lane.b32.xlu2 %v928_v1, %s4450_s24 }
 0x1eb   : > { %1209 = vrot.lane.b32.xlu1 %v936_v5, %s4463_s27 }
 0x1ef   : > { %1265 = vrot.lane.b32.xlu0 %v928_v1, %s4459_s0 }
 0x1f1   : > { %1211 = vrot.lane.b32.xlu2 %v937_v8, %s4463_s27 }
 0x1f3   : > { %1267 = vrot.lane.b32.xlu1 %v929_v7, %s4459_s0 }
 0x1f7   : > { %1323 = vrot.lane.b32.xlu0 %v3941_v61, %s4452_s29 }
 0x1f9   : > { %1321 = vrot.lane.b32.xlu2 %v3946_v0, %s4452_s29  ;;  %s4467_s29 = smov 0.0  }
 0x1fb   : > { %1376 = vrot.lane.b32.xlu1 %v936_v5, %s4454_s1 }
 0x201   : > { %1378 = vrot.lane.b32.xlu2 %v937_v8, %s4454_s1 }
 0x233   : > { %v953_v11 = vpop.permute.xlu2 %952 }
 0x234   : > { %3370 = vmatpush.msk.msrb.mxu2 %vm3981_vm10, %v953_v11 }
 0x235   : > { %3371 = vmatmul.msk.f32.vlgmr.msrb.gmra.mxu2 %vm575_vm0, %v3368_v10 }
 0x23b   : > { %v943_v12 = vpop.permute.xlu2 %942 }
 0x243   : > { %v1107_v13 = vpop.permute.xlu2 %1106 }
 0x249   : > { %v955_v14 = vpop.permute.xlu0 %954 }
 0x24a   : > { %v956_v15 = vsel %vm884_vm2, %v953_v11, %v955_v14 }
 0x24b   : > { %1000 = vmatpush.msrb.mxu3 %v956_v15  ;;  %v1212_v24 = vpop.permute.xlu2 %1211 }
 0x24c   : > { %3372 = vmatmul.msk.f32.vlgmr.msrb.gmra.mxu3 %vm575_vm0, %v3368_v10 }
 0x24d   : > { %v941_v18 = vpop.permute.xlu1 %940 }
 0x24e   : > { %v945_v20 = vsel %vm944_vm11, %v941_v18, %v943_v12  ;;  %3374 = vmatpush.msk.msra.mxu2 %vm3993_vm13, %v941_v18 }
 0x24f   : > { %1043 = vmatpush.msra.mxu3 %v945_v20  ;;  %3375 = vmatmul.msk.f32.vlgmr.msra.gmra.mxu2 %vm575_vm0, %v949_v19 }
 0x250   : > { %3384 = vmatpush.msk.msrb.mxu2 %vm3999_vm14, %v1107_v13 }
 0x251   : > { %v1051_v22 = vpop.permute.xlu0 %1050 }
 0x252   : > { %3379 = vmatpush.msk.msrb.mxu0 %vm4012_vm1, %v1051_v22 }
 0x253   : > { %3380 = vmatmul.msk.f32.vlgmr.msrb.gmra.mxu0 %vm575_vm0, %v3377_v23  ;;  %v1322_v31 = vpop.permute.xlu2 %1321 }
 0x254   : > { %1182 = vmatpush.msra.mxu0 %v3946_v0  ;;  %3376 = vmatmul.msk.f32.vlgmr.msra.gmra.mxu3 %vm575_vm0, %v949_v19 }
 0x255   : > { %v1053_v25 = vpop.permute.xlu1 %1052 }
 0x256   : > { %v1055_v27 = vsel %vm1054_vm15, %v1051_v22, %v1053_v25 }
 0x257   : > { %1099 = vmatpush.msra.mxu1 %v1055_v27  ;;  %3385 = vmatmul.msk.f32.vlgmr.msrb.gmra.mxu2 %vm575_vm0, %v3382_v26 }
 0x258   : > { %3381 = vmatmul.msk.f32.vlgmr.msra.gmra.mxu1 %vm575_vm0, %v3377_v23 }
 0x259   : > { %1202 = vmatpush.msrb.mxu1 %v3941_v61  ;;  %v1109_v28 = vpop.permute.xlu0 %1108 }
 0x25a   : > { %v1111_v30 = vsel %vm1110_vm12, %v1107_v13, %v1109_v28 }
 0x25b   : > { %1155 = vmatpush.msrb.mxu3 %v1111_v30  ;;  %3388 = vmatmul.msk.f32.vlgmr.msra.gmra.mxu0 %vm575_vm0, %v3387_v29  ;;  %v1379_v38 = vpop.permute.xlu2 %1378 }
 0x25c   : > { %3386 = vmatmul.msk.f32.vlgmr.msrb.gmra.mxu3 %vm575_vm0, %v3382_v26 }
 0x25d   : > { %3392 = vmatpush.msk.msra.mxu3 %vm1213_vm3, %v1212_v24  ;;  %v1210_v32 = vpop.permute.xlu1 %1209 }
 0x25e   : > { %v1214_v34 = vsel %vm1213_vm3, %v1210_v32, %v1212_v24 }
 0x25f   : > { %1238 = vmatpush.msra.mxu2 %v1214_v34 }
 0x260   : > { %3391 = vmatmul.msk.f32.vlgmr.msra.gmra.mxu2 %vm575_vm0, %v3390_v33  ;;  %3389 = vmatmul.msk.f32.vlgmr.msrb.gmra.mxu1 %vm575_vm0, %v3387_v29 }
 0x261   : > { %v1266_v35 = vpop.permute.xlu0 %1265 }
 0x264   : > { %3393 = vmatmul.msk.f32.vlgmr.msra.gmra.mxu3 %vm575_vm0, %v3390_v33 }
 0x265   : > { %v1268_v36 = vpop.permute.xlu1 %1267 }
 0x266   : > { %v1270_v39 = vsel %vm1269_vm4, %v1266_v35, %v1268_v36  ;;  %3396 = vmatpush.msk.msra.mxu1 %vm1269_vm4, %v1268_v36 }
 0x267   : > { %1294 = vmatpush.msrb.mxu0 %v1270_v39 }
 0x268   : > { %3404 = vmatpush.msk.msrb.mxu1 %vm1380_vm5, %v1379_v38  ;;  %3395 = vmatmul.msk.f32.vlgmr.msrb.gmra.mxu0 %vm575_vm0, %v3394_v37 }
 0x269   : > { %v1324_v40 = vpop.permute.xlu0 %1323  ;;  %3397 = vmatmul.msk.f32.vlgmr.msra.gmra.mxu1 %vm575_vm0, %v3394_v37 }
 0x26a   : > { %v1325_v42 = vsel %vm896_vm7, %v1322_v31, %v1324_v40  ;;  %3400 = vmatpush.msk.msrb.mxu3 %vm896_vm7, %v1324_v40 }
 0x26b   : > { %1349 = vmatpush.msrb.mxu2 %v1325_v42 }
 0x26c   : > { %3399 = vmatmul.msk.f32.vlgmr.msrb.gmra.mxu2 %vm575_vm0, %v3398_v41  ;;  %3401 = vmatmul.msk.f32.vlgmr.msrb.gmra.mxu3 %vm575_vm0, %v3398_v41 }
 0x26d   : > { %v1377_v43 = vpop.permute.xlu1 %1376 }
 0x26e   : > { %v1381_v45 = vsel %vm1380_vm5, %v1377_v43, %v1379_v38 }
 0x26f   : > { %1405 = vmatpush.msra.mxu0 %v1381_v45 }
 0x270   : > { %3403 = vmatmul.msk.f32.vlgmr.msra.gmra.mxu0 %vm575_vm0, %v3402_v44 }
 0x271   : > { %3405 = vmatmul.msk.f32.vlgmr.msrb.gmra.mxu1 %vm575_vm0, %v3402_v44 }
 0x2b8   : > { %v982_v46 = vpop.f32.mrf.mxu2 }
 0x2cf   : > { %v1002_v47 = vpop.f32.mrf.mxu3 }
 0x2d0   : > { %v1081_v48 = vpop.f32.mrf.mxu0 }
 0x2d2   : > { %v1025_v49 = vpop.f32.mrf.mxu2 }
 0x2d3   : > { %v1026_v54 = vadd.f32 %v1025_v49, %v982_v46 }
 0x2d5   : > { %v1101_v50 = vpop.f32.mrf.mxu1  ;;  %v1104_v58 = vadd.f32 %v1081_v48, %v1026_v54 }
 0x2d7   : > { %v1045_v51 = vpop.f32.mrf.mxu3 }
 0x2d8   : > { %v1184_v52 = vpop.f32.mrf.mxu0  ;;  %v1046_v55 = vadd.f32 %v1045_v51, %v1002_v47 }
 0x2da   : > { %v1137_v53 = vpop.f32.mrf.mxu2  ;;  %v1105_v60 = vadd.f32 %v1101_v50, %v1046_v55 }
 0x2db   : > { %v1160_v62 = vadd.f32 %v1137_v53, %v1104_v58  ;;  %v1472_v53 = vld [vmem:[%s4499_s6] sm:$0xff] }
 0x2dc   : > { %v1475_v58 = vld [vmem:[%s4431_s7] sm:$0xff] }
 0x2dd   : > { %v1204_v56 = vpop.f32.mrf.mxu1  ;;  %v1207_v8 = vadd.f32 %v1184_v52, %v1160_v62  ;;  %v3717_v52 = vmov 0  }
 0x2de   : > { %3614 = vset.pattern.permute.xlu2 %v3717_v52  ;;  %3615 = vset.pattern.permute.xlu1 %v3717_v52 }
 0x2df   : > { %v1157_v57 = vpop.f32.mrf.mxu3  ;;  %3616 = vset.pattern.permute.xlu0 %v3717_v52 }
 0x2e0   : > { %v1161_v63 = vadd.f32 %v1157_v57, %v1105_v60 }
 0x2e2   : > { %v1208_v10 = vadd.f32 %v1204_v56, %v1161_v63 }
 0x2e3   : > { %v1240_v5 = vpop.f32.mrf.mxu2 }
 0x2e4   : > { %v1263_v11 = vadd.f32 %v1240_v5, %v1207_v8 }
 0x2e5   : > { %v1296_v1 = vpop.f32.mrf.mxu0 }
 0x2e6   : > { %v1316_v3 = vpop.f32.mrf.mxu1  ;;  %v1319_v13 = vadd.f32 %v1296_v1, %v1263_v11 }
 0x2e7   : > { %v1260_v7 = vpop.f32.mrf.mxu3 }
 0x2e8   : > { %v1264_v12 = vadd.f32 %v1260_v7, %v1208_v10 }
 0x2ea   : > { %v1320_v14 = vadd.f32 %v1316_v3, %v1264_v12 }
 0x2ed   : > { %v1407_v15 = vpop.f32.mrf.mxu0 }
 0x2ee   : > { %v1427_v18 = vpop.f32.mrf.mxu1 }
 0x2ef   : > { %v1351_v19 = vpop.f32.mrf.mxu2  ;;  %v1371_v20 = vpop.f32.mrf.mxu3 }
 0x2f0   : > { %v1374_v22 = vadd.f32 %v1351_v19, %v1319_v13  ;;  %v1375_v23 = vadd.f32 %v1371_v20, %v1320_v14 }
 0x2f2   : > { %v1430_v24 = vadd.f32 %v1407_v15, %v1374_v22  ;;  %v1431_v25 = vadd.f32 %v1427_v18, %v1375_v23 }
 0x2f4   : > { %v1432_v26 = vadd.f32 %v1431_v25, %v1430_v24  ;;  %v1443_v27 = vmul.f32 %v1430_v24, %v1430_v24  ;;  %v1444_v28 = vmul.f32 %v1431_v25, %v1431_v25 }
 0x2f6   : > { %1433 = vadd.xlane.f32.xlu0 %v1432_v26  ;;  %v1445_v29 = vadd.f32 %v1444_v28, %v1443_v27 }
 0x2f8   : > { %1446 = vadd.xlane.f32.xlu1 %v1445_v29 }
 0x369   : > { %v1434_v30 = vpop.xlane.xlu0 %1433 }
 0x36a   : > { %v1435_v31 = vrot.slane %v1434_v30, 4 }
 0x36b   : > { %v1447_v32 = vpop.xlane.xlu1 %1446 }
 0x36c   : > { %v1436_v33 = vadd.f32 %v1435_v31, %v1434_v30  ;;  %v1448_v34 = vrot.slane %v1447_v32, 4 }
 0x36e   : > { %v1437_v35 = vrot.slane %v1436_v33, 2  ;;  %v1449_v36 = vadd.f32 %v1448_v34, %v1447_v32  ;;  %v3406_v34 = vld [vmem:[%s4432_s8 + $0x8] sm:$0xff] }
 0x370   : > { %v1450_v37 = vrot.slane %v1449_v36, 2  ;;  %v1438_v38 = vadd.f32 %v1437_v35, %v1436_v33 }
 0x372   : > { %v1439_v39 = vrot.slane %v1438_v38, 1  ;;  %v1451_v40 = vadd.f32 %v1450_v37, %v1449_v36 }
 0x374   : > { %v1440_v41 = vadd.f32 %v1439_v39, %v1438_v38  ;;  %v1452_v42 = vrot.slane %v1451_v40, 1  ;;  %v3415_v39 = vld [vmem:[%s4432_s8 + $0x10] sm:$0xff] }
 0x376   : > { %3534 = vpush %v1440_v41  ;;  %v1453_v43 = vadd.f32 %v1452_v42, %v1451_v40  ;;  %v1525_v42 = vld [vmem:[%s4432_s8] sm:$0xff] }
 0x378   : > { %3536 = vpush %v1453_v43 }
 0x3a7   : > { %s3535_s30 = spop %3534 }
 0x3a8   : > { %s4067_s18 = smul.f32 0.00048828125, %s3535_s30 }
 0x3a9   : > { %s3537_s20 = spop %3536 }
 0x3aa   : > { %s1456_s21 = smul.f32 %s4067_s18, %s4067_s18  ;;  %v1476_v56 = vstv %s4067_s18  ;;  %s4500_s18 = smov 15  }
 0x3ab   : > { %s1455_s23 = smul.f32 0.00048828125, %s3537_s20 }
 0x3ad   : > { %s1457_s24 = ssub.f32 %s1455_s23, %s1456_s21  ;;  %s4501_s21 = smov 111  }
 0x3ae   : > { %s4502_s23 = smov 112  }
 0x3af   : > { %s1458_s1 = smax.f32 %s4467_s29, %s1457_s24  ;;  %s4503_s24 = smov 1  }
 0x3b0   : > { %s1459_s26 = sadd.f32 1e-05, %s1458_s1 }
 0x3b2   : > { %v1460_v44 = vstv %s1459_s26 }
 0x3b3   : > { %3617 = vrsqrt.f32 %v1460_v44  ;;  %vm1467_vm8 = vweird.f32 %v1460_v44 }
 0x3b9   : > { %v3618_v45 = vpop.eup %3617 }
 0x3ba   : > { %v1462_v46 = vmul.f32 %v3618_v45, %v1460_v44  ;;  %vm1468_vm6 = vweird.f32 %v3618_v45  ;;  %v3425_v44 = vld [vmem:[%s4432_s8 + $0x20] sm:$0xff] }
 0x3bb   : > { %vm1469_vm9 = vmor %vm1467_vm8, %vm1468_vm6 }
 0x3bc   : > { %v1463_v47 = vmul.f32 %v3618_v45, %v1462_v46 }
 0x3be   : > { %v1464_v48 = vmul.f32 0.5, %v1463_v47 }
 0x3c0   : > { %v1465_v49 = vsub.f32 1.5, %v1464_v48  ;;  %v3420_v48 = vld [vmem:[%s4432_s8 + $0x18] sm:$0xff] }
 0x3c2   : > { %v1466_v50 = vmul.f32 %v3618_v45, %v1465_v49 }
 0x3c4   : > { %v1470_v51 = vsel %vm1469_vm9, %v3618_v45, %v1466_v50 }
 0x3c5   : > { %3538 = vpush %v1470_v51 }
 0x3f6   : > { %s3539_s26 = spop %3538 }
 0x3f7   : > { %v1473_v54 = vstv %s3539_s26 }
 0x3f8   : > { %v1474_v55 = vmul.f32 %v1473_v54, %v1472_v53  ;;  %v3428_v54 = vld [vmem:[%s4432_s8 + $0x28] sm:$0xff] }
 0x3fa   : > { %1481 = vperm.xlu2 %3614, %v1474_v55   ;;  %v1477_v57 = vmul.f32 %v1476_v56, %v1474_v55 }
 0x3fc   : > { %v1478_v60 = vsub.f32 %v1475_v58, %v1477_v57  ;;  %v3432_v57 = vld [vmem:[%s4432_s8 + $0x30] sm:$0xff] }
 0x402   : > { %1488 = vperm.xlu2 %3614, %v1478_v60  }
 0x454   : > { %v1482_v62 = vpop.permute.xlu2 %1481 }
 0x455   : > { %v1484_v63 = vmul.f32 %v1482_v62, %v1430_v24  ;;  %v1485_v1 = vmul.f32 %v1482_v62, %v1431_v25 }
 0x45c   : > { %v1489_v3 = vpop.permute.xlu2 %1488 }
 0x45d   : > { %v1491_v5 = vadd.f32 %v1489_v3, %v1484_v63  ;;  %v1492_v7 = vadd.f32 %v1489_v3, %v1485_v1  ;;  %v3440_v63 = vld [vmem:[%s4432_s8 + $0x40] sm:$0xff]  ;;  %v3436_v3 = vld [vmem:[%s4432_s8 + $0x38] sm:$0xff] }
 0x45f   : > { %v1495_v8 = vmul.f32 0.044715, %v1491_v5  ;;  %v1496_v10 = vmul.f32 0.044715, %v1492_v7  ;;  %v1493_v26 = vmul.f32 0.5, %v1491_v5  ;;  %v1494_v25 = vmul.f32 0.5, %v1492_v7 }
 0x461   : > { %v1497_v11 = vmul.f32 %v1495_v8, %v1491_v5  ;;  %v1498_v12 = vmul.f32 %v1496_v10, %v1492_v7 }
 0x463   : > { %v1499_v13 = vmul.f32 %v1497_v11, %v1491_v5  ;;  %v1500_v14 = vmul.f32 %v1498_v12, %v1492_v7 }
 0x465   : > { %v1501_v15 = vadd.f32 %v1499_v13, %v1491_v5  ;;  %v1502_v18 = vadd.f32 %v1500_v14, %v1492_v7 }
 0x467   : > { %v1503_v19 = vmul.f32 0.7978846, %v1501_v15  ;;  %v1504_v20 = vmul.f32 0.7978846, %v1502_v18 }
 0x469   : > { %3619 = vtanh.f32 %v1503_v19 }
 0x46a   : > { %3621 = vtanh.f32 %v1504_v20 }
 0x46f   : > { %v3620_v22 = vpop.eup %3619 }
 0x470   : > { %v3622_v23 = vpop.eup %3621  ;;  %v1507_v24 = vadd.f32 1.0, %v3620_v22 }
 0x471   : > { %v1508_v27 = vadd.f32 1.0, %v3622_v23 }
 0x472   : > { %v1509_v28 = vmul.f32 %v1507_v24, %v1493_v26 }
 0x473   : > { %v1510_v29 = vmul.f32 %v1508_v27, %v1494_v25 }
 0x474   : > { %1528 = vrot.lane.b32.xlu2 %v1509_v28, %s4465_s22  ;;  %v1511_v30 = vmul.f32 %v1509_v28, %v3938_v59  ;;  %v1513_v32 = vmul.f32 %v1509_v28, %v3952_v2 }
 0x475   : > { %v1512_v31 = vmul.f32 %v1510_v29, %v3955_v4  ;;  %v1514_v33 = vmul.f32 %v1510_v29, %v3959_v6 }
 0x476   : > { %1517 = vrot.lane.b32.xlu0 %v1511_v30, %s4461_s19 }
 0x477   : > { %1519 = vrot.lane.b32.xlu1 %v1512_v31, %s4461_s19 }
 0x47c   : > { %1530 = vrot.lane.b32.xlu2 %v1510_v29, %s4465_s22 }
 0x47e   : > { %1838 = vrot.lane.b32.xlu0 %v1511_v30, %s4459_s0 }
 0x47f   : > { %1783 = vrot.lane.b32.xlu1 %v1513_v32, %s4463_s27 }
 0x484   : > { %1626 = vrot.lane.b32.xlu2 %v1513_v32, %s4500_s18 }
 0x486   : > { %1785 = vrot.lane.b32.xlu0 %v1514_v33, %s4463_s27 }
 0x487   : > { %1950 = vrot.lane.b32.xlu1 %v1514_v33, %s4501_s21 }
 0x48c   : > { %1628 = vrot.lane.b32.xlu2 %v1514_v33, %s4500_s18 }
 0x48e   : > { %1893 = vrot.lane.b32.xlu0 %v1509_v28, %s4502_s23 }
 0x494   : > { %1681 = vrot.lane.b32.xlu2 %v1511_v30, %s4503_s24 }
 0x49c   : > { %1683 = vrot.lane.b32.xlu2 %v1512_v31, %s4503_s24 }
 0x4a4   : > { %1840 = vrot.lane.b32.xlu2 %v1512_v31, %s4459_s0 }
 0x4ac   : > { %1948 = vrot.lane.b32.xlu2 %v1513_v32, %s4501_s21 }
 0x4b4   : > { %1895 = vrot.lane.b32.xlu2 %v1510_v29, %s4502_s23 }
 0x4ce   : > { %v1529_v35 = vpop.permute.xlu2 %1528 }
 0x4cf   : > { %3408 = vmatpush.msk.msra.mxu2 %vm3981_vm10, %v1529_v35 }
 0x4d0   : > { %3409 = vmatmul.msk.f32.vlgmr.msra.gmra.mxu2 %vm575_vm0, %v3406_v34 }
 0x4d6   : > { %v1531_v36 = vpop.permute.xlu2 %1530 }
 0x4d7   : > { %v1532_v37 = vsel %vm884_vm2, %v1529_v35, %v1531_v36 }
 0x4d8   : > { %1576 = vmatpush.msra.mxu3 %v1532_v37 }
 0x4d9   : > { %3410 = vmatmul.msk.f32.vlgmr.msra.gmra.mxu3 %vm575_vm0, %v3406_v34 }
 0x4de   : > { %v1627_v38 = vpop.permute.xlu2 %1626 }
 0x4df   : > { %3417 = vmatpush.msk.msrb.mxu2 %vm4012_vm1, %v1627_v38 }
 0x4e0   : > { %3418 = vmatmul.msk.f32.vlgmr.msrb.gmra.mxu2 %vm575_vm0, %v3415_v39 }
 0x4e1   : > { %1756 = vmatpush.msra.mxu2 %v1509_v28 }
 0x4e6   : > { %v1629_v40 = vpop.permute.xlu2 %1628 }
 0x4e7   : > { %v1630_v41 = vsel %vm1054_vm15, %v1627_v38, %v1629_v40 }
 0x4e8   : > { %1674 = vmatpush.msrb.mxu3 %v1630_v41  ;;  %v1518_v43 = vpop.permute.xlu0 %1517  ;;  %3426 = vmatmul.msk.f32.vlgmr.msra.gmra.mxu2 %vm575_vm0, %v3425_v44 }
 0x4e9   : > { %v1520_v45 = vpop.permute.xlu1 %1519  ;;  %3412 = vmatpush.msk.msrb.mxu0 %vm3993_vm13, %v1518_v43  ;;  %3419 = vmatmul.msk.f32.vlgmr.msrb.gmra.mxu3 %vm575_vm0, %v3415_v39 }
 0x4ea   : > { %1776 = vmatpush.msra.mxu3 %v1510_v29  ;;  %v1521_v46 = vsel %vm944_vm11, %v1518_v43, %v1520_v45  ;;  %3413 = vmatmul.msk.f32.vlgmr.msrb.gmra.mxu0 %vm575_vm0, %v1525_v42 }
 0x4eb   : > { %1619 = vmatpush.msra.mxu1 %v1521_v46 }
 0x4ec   : > { %3414 = vmatmul.msk.f32.vlgmr.msra.gmra.mxu1 %vm575_vm0, %v1525_v42 }
 0x4ee   : > { %v1682_v47 = vpop.permute.xlu2 %1681 }
 0x4ef   : > { %3422 = vmatpush.msk.msra.mxu0 %vm3999_vm14, %v1682_v47 }
 0x4f0   : > { %v1839_v49 = vpop.permute.xlu0 %1838 }
 0x4f1   : > { %3427 = vmatmul.msk.f32.vlgmr.msra.gmra.mxu3 %vm575_vm0, %v3425_v44  ;;  %v1784_v50 = vpop.permute.xlu1 %1783 }
 0x4f2   : > { %3423 = vmatmul.msk.f32.vlgmr.msra.gmra.mxu0 %vm575_vm0, %v3420_v48 }
 0x4f6   : > { %v1684_v51 = vpop.permute.xlu2 %1683 }
 0x4f7   : > { %v1685_v52 = vsel %vm1110_vm12, %v1682_v47, %v1684_v51 }
 0x4f8   : > { %1729 = vmatpush.msrb.mxu1 %v1685_v52  ;;  %v1786_v53 = vpop.permute.xlu0 %1785 }
 0x4f9   : > { %v1787_v55 = vsel %vm1213_vm3, %v1784_v50, %v1786_v53  ;;  %3424 = vmatmul.msk.f32.vlgmr.msrb.gmra.mxu1 %vm575_vm0, %v3420_v48  ;;  %v1951_v58 = vpop.permute.xlu1 %1950 }
 0x4fa   : > { %3430 = vmatpush.msk.msra.mxu1 %vm1213_vm3, %v1786_v53  ;;  %1811 = vmatpush.msrb.mxu0 %v1787_v55 }
 0x4fb   : > { %3429 = vmatmul.msk.f32.vlgmr.msrb.gmra.mxu0 %vm575_vm0, %v3428_v54 }
 0x4fe   : > { %v1841_v56 = vpop.permute.xlu2 %1840 }
 0x4ff   : > { %v1842_v60 = vsel %vm1269_vm4, %v1839_v49, %v1841_v56  ;;  %3434 = vmatpush.msk.msrb.mxu3 %vm1269_vm4, %v1841_v56 }
 0x500   : > { %1866 = vmatpush.msrb.mxu2 %v1842_v60  ;;  %3435 = vmatmul.msk.f32.vlgmr.msrb.gmra.mxu3 %vm575_vm0, %v3432_v57  ;;  %v1894_v5 = vpop.permute.xlu0 %1893 }
 0x501   : > { %3442 = vmatpush.msk.msra.mxu3 %vm1380_vm5, %v1951_v58  ;;  %3433 = vmatmul.msk.f32.vlgmr.msrb.gmra.mxu2 %vm575_vm0, %v3432_v57 }
 0x502   : > { %3431 = vmatmul.msk.f32.vlgmr.msra.gmra.mxu1 %vm575_vm0, %v3428_v54 }
 0x506   : > { %v1949_v62 = vpop.permute.xlu2 %1948 }
 0x507   : > { %v1952_v1 = vsel %vm1380_vm5, %v1949_v62, %v1951_v58 }
 0x508   : > { %1976 = vmatpush.msra.mxu2 %v1952_v1  ;;  %3443 = vmatmul.msk.f32.vlgmr.msra.gmra.mxu3 %vm575_vm0, %v3440_v63 }
 0x509   : > { %3441 = vmatmul.msk.f32.vlgmr.msra.gmra.mxu2 %vm575_vm0, %v3440_v63 }
 0x50e   : > { %v1896_v7 = vpop.permute.xlu2 %1895 }
 0x50f   : > { %v1897_v8 = vsel %vm896_vm7, %v1894_v5, %v1896_v7  ;;  %3438 = vmatpush.msk.msrb.mxu1 %vm896_vm7, %v1896_v7 }
 0x510   : > { %1921 = vmatpush.msra.mxu0 %v1897_v8  ;;  %3439 = vmatmul.msk.f32.vlgmr.msrb.gmra.mxu1 %vm575_vm0, %v3436_v3 }
 0x511   : > { %3437 = vmatmul.msk.f32.vlgmr.msra.gmra.mxu0 %vm575_vm0, %v3436_v3 }
 0x553   : > { %v1558_v11 = vpop.f32.mrf.mxu2 }
 0x55c   : > { %v1578_v10 = vpop.f32.mrf.mxu3 }
 0x563   : > { %v1656_v15 = vpop.f32.mrf.mxu2 }
 0x567   : > { %v1601_v13 = vpop.f32.mrf.mxu0 }
 0x568   : > { %v1602_v18 = vadd.f32 %v1601_v13, %v1558_v11 }
 0x569   : > { %v1621_v12 = vpop.f32.mrf.mxu1 }
 0x56a   : > { %v1622_v23 = vadd.f32 %v1621_v12, %v1578_v10  ;;  %v1679_v24 = vadd.f32 %v1656_v15, %v1602_v18  ;;  %v2043_v18 = vld [vmem:[%s4433_s9] sm:$0xff] }
 0x56b   : > { %v1758_v26 = vpop.f32.mrf.mxu2 }
 0x56c   : > { %v1676_v14 = vpop.f32.mrf.mxu3 }
 0x56d   : > { %v1680_v25 = vadd.f32 %v1676_v14, %v1622_v23 }
 0x56f   : > { %v1711_v20 = vpop.f32.mrf.mxu0 }
 0x570   : > { %v1734_v27 = vadd.f32 %v1711_v20, %v1679_v24 }
 0x572   : > { %v1781_v33 = vadd.f32 %v1758_v26, %v1734_v27  ;;  %v2046_v26 = vld [vmem:[%s4434_s10] sm:$0xff] }
 0x574   : > { %v1778_v22 = vpop.f32.mrf.mxu3 }
 0x576   : > { %v1731_v19 = vpop.f32.mrf.mxu1 }
 0x577   : > { %v1735_v28 = vadd.f32 %v1731_v19, %v1680_v25 }
 0x578   : > { %v1813_v31 = vpop.f32.mrf.mxu0 }
 0x579   : > { %v1782_v34 = vadd.f32 %v1778_v22, %v1735_v28  ;;  %v1836_v36 = vadd.f32 %v1813_v31, %v1781_v33 }
 0x57f   : > { %v1833_v29 = vpop.f32.mrf.mxu1 }
 0x580   : > { %v1837_v35 = vadd.f32 %v1833_v29, %v1782_v34 }
 0x583   : > { %v1888_v30 = vpop.f32.mrf.mxu3 }
 0x584   : > { %v1868_v32 = vpop.f32.mrf.mxu2  ;;  %v1892_v37 = vadd.f32 %v1888_v30, %v1837_v35 }
 0x585   : > { %v1891_v38 = vadd.f32 %v1868_v32, %v1836_v36 }
 0x58b   : > { %v1998_v40 = vpop.f32.mrf.mxu3 }
 0x58c   : > { %v1978_v43 = vpop.f32.mrf.mxu2 }
 0x58d   : > { %v1943_v39 = vpop.f32.mrf.mxu1 }
 0x58e   : > { %v1947_v41 = vadd.f32 %v1943_v39, %v1892_v37  ;;  %v1923_v42 = vpop.f32.mrf.mxu0 }
 0x58f   : > { %v1946_v44 = vadd.f32 %v1923_v42, %v1891_v38 }
 0x590   : > { %v2002_v45 = vadd.f32 %v1998_v40, %v1947_v41 }
 0x591   : > { %v2001_v46 = vadd.f32 %v1978_v43, %v1946_v44 }
 0x592   : > { %v2015_v47 = vmul.f32 %v2002_v45, %v2002_v45 }
 0x593   : > { %v2003_v48 = vadd.f32 %v2002_v45, %v2001_v46  ;;  %v2014_v49 = vmul.f32 %v2001_v46, %v2001_v46 }
 0x595   : > { %2004 = vadd.xlane.f32.xlu1 %v2003_v48  ;;  %v2016_v50 = vadd.f32 %v2015_v47, %v2014_v49 }
 0x597   : > { %2017 = vadd.xlane.f32.xlu0 %v2016_v50 }
 0x608   : > { %v2005_v51 = vpop.xlane.xlu1 %2004 }
 0x609   : > { %v2006_v52 = vrot.slane %v2005_v51, 4 }
 0x60a   : > { %v2018_v53 = vpop.xlane.xlu0 %2017 }
 0x60b   : > { %v2007_v54 = vadd.f32 %v2006_v52, %v2005_v51  ;;  %v2019_v55 = vrot.slane %v2018_v53, 4 }
 0x60d   : > { %v2008_v56 = vrot.slane %v2007_v54, 2  ;;  %v2020_v57 = vadd.f32 %v2019_v55, %v2018_v53 }
 0x60f   : > { %v2021_v58 = vrot.slane %v2020_v57, 2  ;;  %v2009_v60 = vadd.f32 %v2008_v56, %v2007_v54  ;;  %v3444_v54 = vld [vmem:[%s4435_s11 + $0x4] sm:$0xf]  ;;  %v2098_v56 = vld [vmem:[%s4435_s11] sm:$0xf] }
 0x611   : > { %v2010_v62 = vrot.slane %v2009_v60, 1  ;;  %v2022_v63 = vadd.f32 %v2021_v58, %v2020_v57 }
 0x613   : > { %v2011_v1 = vadd.f32 %v2010_v62, %v2009_v60  ;;  %v2023_v3 = vrot.slane %v2022_v63, 1 }
 0x615   : > { %3540 = vpush %v2011_v1  ;;  %v2024_v5 = vadd.f32 %v2023_v3, %v2022_v63 }
 0x617   : > { %3542 = vpush %v2024_v5 }
 0x646   : > { %s3541_s1 = spop %3540 }
 0x647   : > { %s2013_s26 = smul.f32 0.00048828125, %s3541_s1 }
 0x648   : > { %s3543_s19 = spop %3542 }
 0x649   : > { %s2027_s0 = smul.f32 %s2013_s26, %s2013_s26  ;;  %v2047_v22 = vstv %s2013_s26  ;;  %s4505_s26 = smov 127  }
 0x64a   : > { %s2026_s30 = smul.f32 0.00048828125, %s3543_s19 }
 0x64c   : > { %s2028_s20 = ssub.f32 %s2026_s30, %s2027_s0  ;;  %s4506_s0 = smov 17  }
 0x64d   : > { %s4507_s30 = smov 113  }
 0x64e   : > { %s2029_s27 = smax.f32 %s4467_s29, %s2028_s20 }
 0x64f   : > { %s2030_s22 = sadd.f32 1e-05, %s2029_s27 }
 0x651   : > { %v2031_v7 = vstv %s2030_s22 }
 0x652   : > { %3623 = vrsqrt.f32 %v2031_v7  ;;  %vm2038_vm6 = vweird.f32 %v2031_v7 }
 0x658   : > { %v3624_v8 = vpop.eup %3623 }
 0x659   : > { %v2033_v10 = vmul.f32 %v3624_v8, %v2031_v7  ;;  %vm2039_vm9 = vweird.f32 %v3624_v8  ;;  %v3458_v7 = vld [vmem:[%s4435_s11 + $0xc] sm:$0xf] }
 0x65a   : > { %vm2040_vm8 = vmor %vm2038_vm6, %vm2039_vm9 }
 0x65b   : > { %v2034_v11 = vmul.f32 %v3624_v8, %v2033_v10 }
 0x65d   : > { %v2035_v12 = vmul.f32 0.5, %v2034_v11 }
 0x65f   : > { %v2036_v13 = vsub.f32 1.5, %v2035_v12 }
 0x661   : > { %v2037_v14 = vmul.f32 %v3624_v8, %v2036_v13 }
 0x663   : > { %v2041_v15 = vsel %vm2040_vm8, %v3624_v8, %v2037_v14  ;;  %vm2684_vm8 = vcmask 31744  }
 0x664   : > { %3544 = vpush %v2041_v15 }
 0x695   : > { %s3545_s19 = spop %3544 }
 0x696   : > { %v2044_v19 = vstv %s3545_s19 }
 0x697   : > { %v2045_v20 = vmul.f32 %v2044_v19, %v2043_v18 }
 0x699   : > { %2052 = vperm.xlu2 %3614, %v2045_v20   ;;  %v2048_v23 = vmul.f32 %v2047_v22, %v2045_v20  ;;  %v3470_v20 = vld [vmem:[%s4435_s11 + $0x18] sm:$0xf] }
 0x69b   : > { %v2049_v24 = vsub.f32 %v2046_v26, %v2048_v23 }
 0x6a1   : > { %2059 = vperm.xlu2 %3614, %v2049_v24   ;;  %v3478_v24 = vld [vmem:[%s4435_s11 + $0x20] sm:$0xf] }
 0x6f3   : > { %v2053_v25 = vpop.permute.xlu2 %2052 }
 0x6f4   : > { %v2055_v27 = vmul.f32 %v2053_v25, %v2001_v46  ;;  %v2056_v28 = vmul.f32 %v2053_v25, %v2002_v45 }
 0x6fb   : > { %v2060_v29 = vpop.permute.xlu2 %2059 }
 0x6fc   : > { %v2062_v30 = vadd.f32 %v2060_v29, %v2055_v27  ;;  %v2063_v31 = vadd.f32 %v2060_v29, %v2056_v28  ;;  %v3474_v27 = vld [vmem:[%s4435_s11 + $0x1c] sm:$0xf] }
 0x6fe   : > { %v2064_v32 = vadd.f32 %v2062_v30, %v3946_v0  ;;  %v2065_v33 = vadd.f32 %v2063_v31, %v3941_v61 }
 0x700   : > { %v2068_v34 = vmul.f32 0.044715, %v2064_v32  ;;  %v2069_v35 = vmul.f32 0.044715, %v2065_v33  ;;  %v2067_v46 = vmul.f32 0.5, %v2065_v33  ;;  %v2066_v48 = vmul.f32 0.5, %v2064_v32 }
 0x702   : > { %v2070_v36 = vmul.f32 %v2068_v34, %v2064_v32  ;;  %v2071_v37 = vmul.f32 %v2069_v35, %v2065_v33 }
 0x704   : > { %v2072_v38 = vmul.f32 %v2070_v36, %v2064_v32  ;;  %v2073_v39 = vmul.f32 %v2071_v37, %v2065_v33 }
 0x706   : > { %v2074_v40 = vadd.f32 %v2072_v38, %v2064_v32  ;;  %v2075_v41 = vadd.f32 %v2073_v39, %v2065_v33 }
 0x708   : > { %v2077_v42 = vmul.f32 0.7978846, %v2075_v41  ;;  %v2076_v43 = vmul.f32 0.7978846, %v2074_v40 }
 0x70a   : > { %3625 = vtanh.f32 %v2077_v42 }
 0x70b   : > { %3627 = vtanh.f32 %v2076_v43 }
 0x710   : > { %v3626_v44 = vpop.eup %3625 }
 0x711   : > { %v3628_v45 = vpop.eup %3627  ;;  %v2081_v47 = vadd.f32 1.0, %v3626_v44 }
 0x712   : > { %v2080_v0 = vadd.f32 1.0, %v3628_v45 }
 0x713   : > { %v2083_v49 = vmul.f32 %v2081_v47, %v2067_v46 }
 0x714   : > { %v2082_v61 = vmul.f32 %v2080_v0, %v2066_v48 }
 0x715   : > { %2103 = vrot.lane.b32.xlu1 %v2083_v49, %s4504_s2  ;;  %v2087_v51 = vmul.f32 %v2083_v49, %v3959_v6  ;;  %v2085_v53 = vmul.f32 %v2083_v49, %v3955_v4 }
 0x716   : > { %2101 = vrot.lane.b32.xlu2 %v2082_v61, %s4504_s2  ;;  %v2086_v50 = vmul.f32 %v2082_v61, %v3952_v2  ;;  %v2084_v52 = vmul.f32 %v2082_v61, %v3938_v59 }
 0x718   : > { %2199 = vrot.lane.b32.xlu0 %v2086_v50, %s4500_s18 }
 0x71d   : > { %2358 = vrot.lane.b32.xlu1 %v2087_v51, %s4505_s26 }
 0x71e   : > { %2090 = vrot.lane.b32.xlu2 %v2084_v52, %s4506_s0 }
 0x720   : > { %2356 = vrot.lane.b32.xlu0 %v2086_v50, %s4505_s26 }
 0x725   : > { %2466 = vrot.lane.b32.xlu1 %v2082_v61, %s4502_s23 }
 0x726   : > { %2092 = vrot.lane.b32.xlu2 %v2085_v53, %s4506_s0 }
 0x728   : > { %2413 = vrot.lane.b32.xlu0 %v2085_v53, %s4507_s30 }
 0x72d   : > { %2523 = vrot.lane.b32.xlu1 %v2087_v51, %s4501_s21 }
 0x72e   : > { %2201 = vrot.lane.b32.xlu2 %v2087_v51, %s4500_s18 }
 0x730   : > { %2521 = vrot.lane.b32.xlu0 %v2086_v50, %s4501_s21 }
 0x736   : > { %2254 = vrot.lane.b32.xlu2 %v2084_v52, %s4503_s24 }
 0x73e   : > { %2256 = vrot.lane.b32.xlu2 %v2085_v53, %s4503_s24 }
 0x746   : > { %2411 = vrot.lane.b32.xlu2 %v2084_v52, %s4507_s30 }
 0x74e   : > { %2468 = vrot.lane.b32.xlu2 %v2083_v49, %s4502_s23 }
 0x770   : > { %v2102_v55 = vpop.permute.xlu2 %2101 }
 0x771   : > { %3446 = vmatpush.msk.msrb.mxu0 %vm3981_vm10, %v2102_v55 }
 0x772   : > { %3447 = vmatmul.msk.f32.vlgmr.msrb.gmra.mxu0 %vm575_vm0, %v3444_v54 }
 0x778   : > { %v2091_v57 = vpop.permute.xlu2 %2090 }
 0x779   : > { %3450 = vmatpush.msk.msrb.mxu2 %vm3993_vm13, %v2091_v57 }
 0x77a   : > { %3451 = vmatmul.msk.f32.vlgmr.msrb.gmra.mxu2 %vm575_vm0, %v2098_v56 }
 0x780   : > { %v2093_v58 = vpop.permute.xlu2 %2092 }
 0x781   : > { %v2094_v60 = vsel %vm944_vm11, %v2091_v57, %v2093_v58 }
 0x782   : > { %2192 = vmatpush.msrb.mxu3 %v2094_v60 }
 0x783   : > { %3452 = vmatmul.msk.f32.vlgmr.msrb.gmra.mxu3 %vm575_vm0, %v2098_v56 }
 0x787   : > { %v2104_v9 = vpop.permute.xlu1 %2103 }
 0x788   : > { %v2105_v62 = vsel %vm884_vm2, %v2102_v55, %v2104_v9  ;;  %v2202_v63 = vpop.permute.xlu2 %2201 }
 0x789   : > { %2149 = vmatpush.msra.mxu1 %v2105_v62 }
 0x78a   : > { %v2200_v1 = vpop.permute.xlu0 %2199  ;;  %3448 = vmatmul.msk.f32.vlgmr.msra.gmra.mxu1 %vm575_vm0, %v3444_v54 }
 0x78b   : > { %v2203_v3 = vsel %vm1054_vm15, %v2200_v1, %v2202_v63  ;;  %3455 = vmatpush.msk.msra.mxu0 %vm4012_vm1, %v2200_v1 }
 0x78c   : > { %2247 = vmatpush.msrb.mxu1 %v2203_v3  ;;  %3456 = vmatmul.msk.f32.vlgmr.msra.gmra.mxu0 %vm575_vm0, %v3453_v16 }
 0x78d   : > { %2329 = vmatpush.msrb.mxu0 %v2082_v61 }
 0x78e   : > { %2349 = vmatpush.msra.mxu1 %v2083_v49 }
 0x78f   : > { %v2359_v5 = vpop.permute.xlu1 %2358 }
 0x790   : > { %v2255_v8 = vpop.permute.xlu2 %2254 }
 0x791   : > { %3460 = vmatpush.msk.msra.mxu2 %vm3999_vm14, %v2255_v8 }
 0x792   : > { %v2357_v10 = vpop.permute.xlu0 %2356  ;;  %3457 = vmatmul.msk.f32.vlgmr.msrb.gmra.mxu1 %vm575_vm0, %v3453_v16  ;;  %3461 = vmatmul.msk.f32.vlgmr.msra.gmra.mxu2 %vm575_vm0, %v3458_v7 }
 0x793   : > { %v2360_v11 = vsel %vm1213_vm3, %v2357_v10, %v2359_v5 }
 0x794   : > { %2384 = vmatpush.msrb.mxu2 %v2360_v11  ;;  %3464 = vmatmul.msk.f32.vlgmr.msrb.gmra.mxu0 %vm575_vm0, %v3463_v21 }
 0x797   : > { %v2467_v12 = vpop.permute.xlu1 %2466 }
 0x798   : > { %v2257_v13 = vpop.permute.xlu2 %2256 }
 0x799   : > { %v2258_v14 = vsel %vm1110_vm12, %v2255_v8, %v2257_v13 }
 0x79a   : > { %v2414_v15 = vpop.permute.xlu0 %2413  ;;  %2302 = vmatpush.msra.mxu3 %v2258_v14  ;;  %3465 = vmatmul.msk.f32.vlgmr.msra.gmra.mxu1 %vm575_vm0, %v3463_v21 }
 0x79b   : > { %3462 = vmatmul.msk.f32.vlgmr.msra.gmra.mxu3 %vm575_vm0, %v3458_v7  ;;  %3472 = vmatpush.msk.msrb.mxu1 %vm1269_vm4, %v2414_v15 }
 0x79c   : > { %3468 = vmatpush.msk.msrb.mxu3 %vm1213_vm3, %v2359_v5  ;;  %3467 = vmatmul.msk.f32.vlgmr.msrb.gmra.mxu2 %vm575_vm0, %v3466_v17 }
 0x79f   : > { %v2524_v18 = vpop.permute.xlu1 %2523 }
 0x7a0   : > { %v2412_v19 = vpop.permute.xlu2 %2411  ;;  %3480 = vmatpush.msk.msra.mxu1 %vm1380_vm5, %v2524_v18 }
 0x7a1   : > { %v2415_v22 = vsel %vm1269_vm4, %v2412_v19, %v2414_v15 }
 0x7a2   : > { %v2522_v23 = vpop.permute.xlu0 %2521  ;;  %2439 = vmatpush.msra.mxu0 %v2415_v22  ;;  %3473 = vmatmul.msk.f32.vlgmr.msrb.gmra.mxu1 %vm575_vm0, %v3470_v20 }
 0x7a3   : > { %v2525_v26 = vsel %vm1380_vm5, %v2522_v23, %v2524_v18  ;;  %3469 = vmatmul.msk.f32.vlgmr.msrb.gmra.mxu3 %vm575_vm0, %v3466_v17  ;;  %3471 = vmatmul.msk.f32.vlgmr.msra.gmra.mxu0 %vm575_vm0, %v3470_v20 }
 0x7a4   : > { %2549 = vmatpush.msrb.mxu0 %v2525_v26 }
 0x7a8   : > { %v2469_v25 = vpop.permute.xlu2 %2468 }
 0x7a9   : > { %v2470_v28 = vsel %vm896_vm7, %v2467_v12, %v2469_v25  ;;  %3476 = vmatpush.msk.msra.mxu3 %vm896_vm7, %v2469_v25 }
 0x7aa   : > { %2494 = vmatpush.msra.mxu2 %v2470_v28  ;;  %3481 = vmatmul.msk.f32.vlgmr.msra.gmra.mxu1 %vm575_vm0, %v3478_v24 }
 0x7ab   : > { %3475 = vmatmul.msk.f32.vlgmr.msra.gmra.mxu2 %vm575_vm0, %v3474_v27  ;;  %3477 = vmatmul.msk.f32.vlgmr.msra.gmra.mxu3 %vm575_vm0, %v3474_v27 }
 0x7ac   : > { %3479 = vmatmul.msk.f32.vlgmr.msrb.gmra.mxu0 %vm575_vm0, %v3478_v24  ;;  %vm4508_vm0 = vcmask 1043456  }
 0x7ad   : > { %vm4509_vm10 = vmmov %vm4508_vm0 }
 0x7ae   : > { %vm4510_vm13 = vmmov %vm4508_vm0 }
 0x7af   : > { %vm4511_vm14 = vmmov %vm4508_vm0 }
 0x7ef   : > { %v2131_v29 = vpop.f32.mrf.mxu0 }
 0x7fd   : > { %v2174_v33 = vpop.f32.mrf.mxu2 }
 0x7fe   : > { %v2175_v36 = vadd.f32 %v2174_v33, %v2131_v29  ;;  %v2620_v33 = vld [vmem:[%s4436_s12] sm:$0xf] }
 0x806   : > { %v2194_v34 = vpop.f32.mrf.mxu3 }
 0x807   : > { %v2151_v30 = vpop.f32.mrf.mxu1 }
 0x808   : > { %v2195_v39 = vadd.f32 %v2194_v34, %v2151_v30 }
 0x809   : > { %v2229_v31 = vpop.f32.mrf.mxu0 }
 0x80a   : > { %v2252_v41 = vadd.f32 %v2229_v31, %v2175_v36 }
 0x80f   : > { %v2249_v32 = vpop.f32.mrf.mxu1 }
 0x810   : > { %v2253_v42 = vadd.f32 %v2249_v32, %v2195_v39 }
 0x811   : > { %v2331_v37 = vpop.f32.mrf.mxu0 }
 0x815   : > { %v2284_v38 = vpop.f32.mrf.mxu2 }
 0x816   : > { %v2307_v43 = vadd.f32 %v2284_v38, %v2252_v41  ;;  %v2623_v38 = vld [vmem:[%s4437_s13] sm:$0xf] }
 0x817   : > { %v2351_v35 = vpop.f32.mrf.mxu1 }
 0x818   : > { %v2354_v0 = vadd.f32 %v2331_v37, %v2307_v43 }
 0x81e   : > { %v2304_v40 = vpop.f32.mrf.mxu3 }
 0x81f   : > { %v2308_v44 = vadd.f32 %v2304_v40, %v2253_v42  ;;  %v2461_v45 = vpop.f32.mrf.mxu1  ;;  %v2386_v47 = vpop.f32.mrf.mxu2 }
 0x820   : > { %v2441_v46 = vpop.f32.mrf.mxu0  ;;  %v2409_v61 = vadd.f32 %v2386_v47, %v2354_v0 }
 0x821   : > { %v2355_v49 = vadd.f32 %v2351_v35, %v2308_v44 }
 0x822   : > { %v2464_v51 = vadd.f32 %v2441_v46, %v2409_v61 }
 0x826   : > { %v2406_v48 = vpop.f32.mrf.mxu3 }
 0x827   : > { %v2410_v50 = vadd.f32 %v2406_v48, %v2355_v49  ;;  %v2571_v54 = vpop.f32.mrf.mxu1 }
 0x829   : > { %v2465_v52 = vadd.f32 %v2461_v45, %v2410_v50  ;;  %v2551_v53 = vpop.f32.mrf.mxu0 }
 0x82e   : > { %v2496_v55 = vpop.f32.mrf.mxu2  ;;  %v2516_v56 = vpop.f32.mrf.mxu3 }
 0x82f   : > { %v2519_v57 = vadd.f32 %v2496_v55, %v2464_v51  ;;  %v2520_v58 = vadd.f32 %v2516_v56, %v2465_v52 }
 0x831   : > { %v2574_v60 = vadd.f32 %v2551_v53, %v2519_v57  ;;  %v2575_v9 = vadd.f32 %v2571_v54, %v2520_v58 }
 0x833   : > { %v2576_v62 = vsel %vm4508_vm0, %v2574_v60, 0.0  ;;  %v2577_v63 = vsel %vm4509_vm10, %v2575_v9, 0.0  ;;  %v2589_v1 = vmul.f32 %v2574_v60, %v2574_v60  ;;  %v2590_v16 = vmul.f32 %v2575_v9, %v2575_v9  ;;  %vm4513_vm10 = vmmov %vm4508_vm0 }
 0x834   : > { %v2578_v3 = vadd.f32 %v2577_v63, %v2576_v62 }
 0x835   : > { %v2591_v5 = vsel %vm4510_vm13, %v2589_v1, 0.0  ;;  %v2592_v7 = vsel %vm4511_vm14, %v2590_v16, 0.0  ;;  %vm4514_vm13 = vmmov %vm4508_vm0 }
 0x836   : > { %2579 = vadd.xlane.f32.xlu2 %v2578_v3  ;;  %v2593_v8 = vadd.f32 %v2592_v7, %v2591_v5  ;;  %v2672_v5 = vld [vmem:[%s4438_s14] sm:$0xf]  ;;  %vm4515_vm14 = vmmov %vm4508_vm0 }
 0x838   : > { %2594 = vadd.xlane.f32.xlu0 %v2593_v8 }
 0x8a9   : > { %v2580_v10 = vpop.xlane.xlu2 %2579 }
 0x8aa   : > { %v2581_v21 = vrot.slane %v2580_v10, 4 }
 0x8ab   : > { %v2595_v11 = vpop.xlane.xlu0 %2594 }
 0x8ac   : > { %v2582_v12 = vadd.f32 %v2581_v21, %v2580_v10  ;;  %v2596_v13 = vrot.slane %v2595_v11, 4 }
 0x8ae   : > { %v2583_v14 = vrot.slane %v2582_v12, 2  ;;  %v2597_v17 = vadd.f32 %v2596_v13, %v2595_v11 }
 0x8b0   : > { %v2598_v15 = vrot.slane %v2597_v17, 2  ;;  %v2584_v18 = vadd.f32 %v2583_v14, %v2582_v12 }
 0x8b2   : > { %v2585_v19 = vrot.slane %v2584_v18, 1  ;;  %v2599_v20 = vadd.f32 %v2598_v15, %v2597_v17  ;;  %v3491_v17 = vld [vmem:[%s4438_s14 + $0x8] sm:$0xf] }
 0x8b4   : > { %v2586_v22 = vadd.f32 %v2585_v19, %v2584_v18  ;;  %v2600_v23 = vrot.slane %v2599_v20, 1 }
 0x8b6   : > { %3546 = vpush %v2586_v22  ;;  %v2601_v26 = vadd.f32 %v2600_v23, %v2599_v20  ;;  %v3501_v23 = vld [vmem:[%s4438_s14 + $0x10] sm:$0xf] }
 0x8b8   : > { %3548 = vpush %v2601_v26 }
 0x8e7   : > { %s3547_s22 = spop %3546 }
 0x8e8   : > { %s2588_s27 = smul.f32 0.0009765625, %s3547_s22  ;;  %s554_s22 = sand.u32 1, %s3691_s25  }
 0x8e9   : > { %s3549_s20 = spop %3548 }
 0x8ea   : > { %s2604_s1 = smul.f32 %s2588_s27, %s2588_s27  ;;  %v2624_v36 = vstv %s2588_s27  ;;  %s3657_s27 = scalar_lea.hbm %s4441_s17, 16 }
 0x8eb   : > { %s2603_s19 = smul.f32 0.0009765625, %s3549_s20 }
 0x8ed   : > { %s2605_s29 = ssub.f32 %s2603_s19, %s2604_s1 }
 0x8ef   : > { %s2606_s4 = smax.f32 %s4512_s3, %s2605_s29 }
 0x8f0   : > { %s2607_s5 = sadd.f32 1e-05, %s2606_s4  ;;  %s3533_s4 = sshll.u32 %s3829_s28, 3 }
 0x8f1   : > { %s3260_s28 = scalar_lea.sflag [#allocation3], %s554_s22 }
 0x8f2   : > { %v2608_v24 = vstv %s2607_s5 }
 0x8f3   : > { %3629 = vrsqrt.f32 %v2608_v24  ;;  %vm2615_vm9 = vweird.f32 %v2608_v24 }
 0x8f9   : > { %v3630_v25 = vpop.eup %3629 }
 0x8fa   : > { %v2610_v27 = vmul.f32 %v3630_v25, %v2608_v24  ;;  %vm2616_vm1 = vweird.f32 %v3630_v25 }
 0x8fb   : > { %vm2617_vm6 = vmor %vm2615_vm9, %vm2616_vm1 }
 0x8fc   : > { %v2611_v28 = vmul.f32 %v3630_v25, %v2610_v27  ;;  %vm4516_vm1 = vmmov %vm4508_vm0 }
 0x8fd   : > { %vm4518_vm9 = vmmov %vm4508_vm0 }
 0x8fe   : > { %v2612_v29 = vmul.f32 0.5, %v2611_v28  ;;  %v3511_v28 = vld [vmem:[%s4438_s14 + $0x18] sm:$0xf] }
 0x900   : > { %v2613_v30 = vsub.f32 1.5, %v2612_v29 }
 0x902   : > { %v2614_v31 = vmul.f32 %v3630_v25, %v2613_v30 }
 0x904   : > { %v2618_v32 = vsel %vm2617_vm6, %v3630_v25, %v2614_v31  ;;  %vm4520_vm6 = vmmov %vm4508_vm0  ;;  %v3496_v25 = vld [vmem:[%s4438_s14 + $0xc] sm:$0xf] }
 0x905   : > { %3550 = vpush %v2618_v32 }
 0x936   : > { %s3551_s20 = spop %3550 }
 0x937   : > { %v2621_v34 = vstv %s3551_s20  ;;  %s3351_s20 = sshll.u32 %s554_s22, 3 }
 0x938   : > { %v2622_v35 = vmul.f32 %v2621_v34, %v2620_v33 }
 0x93a   : > { %2629 = vperm.xlu1 %3615, %v2622_v35   ;;  %v2625_v37 = vmul.f32 %v2624_v36, %v2622_v35 }
 0x93c   : > { %v2626_v39 = vsub.f32 %v2623_v38, %v2625_v37  ;;  %v3506_v38 = vld [vmem:[%s4438_s14 + $0x14] sm:$0xf] }
 0x942   : > { %2636 = vperm.xlu1 %3615, %v2626_v39  }
 0x9ac   : > { %v2630_v40 = vpop.permute.xlu1 %2629 }
 0x9ad   : > { %v2632_v41 = vmul.f32 %v2630_v40, %v2574_v60  ;;  %v2633_v42 = vmul.f32 %v2630_v40, %v2575_v9 }
 0x9b4   : > { %v2637_v43 = vpop.permute.xlu1 %2636 }
 0x9b5   : > { %v2639_v44 = vadd.f32 %v2637_v43, %v2632_v41  ;;  %v2640_v45 = vadd.f32 %v2637_v43, %v2633_v42  ;;  %v3521_v41 = vld [vmem:[%s4438_s14 + $0x20] sm:$0xf] }
 0x9b7   : > { %v2643_v46 = vmul.f32 0.044715, %v2639_v44  ;;  %v2644_v47 = vmul.f32 0.044715, %v2640_v45  ;;  %v2641_v56 = vmul.f32 0.5, %v2639_v44  ;;  %v2642_v58 = vmul.f32 0.5, %v2640_v45 }
 0x9b9   : > { %v2645_v48 = vmul.f32 %v2643_v46, %v2639_v44  ;;  %v2646_v0 = vmul.f32 %v2644_v47, %v2640_v45 }
 0x9bb   : > { %v2647_v49 = vmul.f32 %v2645_v48, %v2639_v44  ;;  %v2648_v61 = vmul.f32 %v2646_v0, %v2640_v45 }
 0x9bd   : > { %v2649_v50 = vadd.f32 %v2647_v49, %v2639_v44  ;;  %v2650_v51 = vadd.f32 %v2648_v61, %v2640_v45  ;;  %v3516_v44 = vld [vmem:[%s4438_s14 + $0x1c] sm:$0xf] }
 0x9bf   : > { %v2651_v52 = vmul.f32 0.7978846, %v2649_v50  ;;  %v2652_v53 = vmul.f32 0.7978846, %v2650_v51 }
 0x9c1   : > { %3631 = vtanh.f32 %v2651_v52 }
 0x9c2   : > { %3633 = vtanh.f32 %v2652_v53 }
 0x9c7   : > { %v3632_v54 = vpop.eup %3631 }
 0x9c8   : > { %v3634_v55 = vpop.eup %3633  ;;  %v2655_v57 = vadd.f32 1.0, %v3632_v54 }
 0x9c9   : > { %v2656_v60 = vadd.f32 1.0, %v3634_v55 }
 0x9ca   : > { %v2657_v9 = vmul.f32 %v2655_v57, %v2641_v56 }
 0x9cb   : > { %v2658_v62 = vmul.f32 %v2656_v60, %v2642_v58 }
 0x9cc   : > { %2675 = vrot.lane.b32.xlu1 %v2657_v9, %s4504_s2  ;;  %v2659_v63 = vmul.f32 %v2657_v9, %v3938_v59  ;;  %v2661_v3 = vmul.f32 %v2657_v9, %v3952_v2  ;;  %v3482_v2 = vld [vmem:[%s4438_s14 + $0x4] sm:$0xf] }
 0x9cd   : > { %v2662_v1 = vmul.f32 %v2658_v62, %v3959_v6  ;;  %v2660_v16 = vmul.f32 %v2658_v62, %v3955_v4 }
 0x9ce   : > { %2665 = vrot.lane.b32.xlu0 %v2659_v63, %s4506_s0 }
 0x9cf   : > { %2785 = vrot.lane.b32.xlu2 %v2662_v1, %s4500_s18 }
 0x9d4   : > { %2677 = vrot.lane.b32.xlu1 %v2658_v62, %s4504_s2 }
 0x9d6   : > { %3013 = vrot.lane.b32.xlu0 %v2660_v16, %s4507_s30 }
 0x9d7   : > { %3011 = vrot.lane.b32.xlu2 %v2659_v63, %s4507_s30 }
 0x9dc   : > { %2783 = vrot.lane.b32.xlu1 %v2661_v3, %s4500_s18 }
 0x9de   : > { %3129 = vrot.lane.b32.xlu0 %v2661_v3, %s4501_s21 }
 0x9df   : > { %2954 = vrot.lane.b32.xlu2 %v2662_v1, %s4505_s26 }
 0x9e4   : > { %2667 = vrot.lane.b32.xlu1 %v2660_v16, %s4506_s0 }
 0x9e6   : > { %3072 = vrot.lane.b32.xlu0 %v2658_v62, %s4502_s23 }
 0x9e7   : > { %3070 = vrot.lane.b32.xlu2 %v2657_v9, %s4502_s23 }
 0x9ec   : > { %2842 = vrot.lane.b32.xlu1 %v2659_v63, %s4503_s24 }
 0x9f4   : > { %2844 = vrot.lane.b32.xlu1 %v2660_v16, %s4503_s24 }
 0x9fc   : > { %2952 = vrot.lane.b32.xlu1 %v2661_v3, %s4505_s26 }
 0xa04   : > { %3131 = vrot.lane.b32.xlu1 %v2662_v1, %s4501_s21 }
 0xa29   : > { %v2786_v10 = vpop.permute.xlu2 %2785 }
 0xa31   : > { %v3012_v15 = vpop.permute.xlu2 %3011 }
 0xa39   : > { %v2955_v29 = vpop.permute.xlu2 %2954 }
 0xa3a   : > { %v2958_v33 = vsel %vm1213_vm3, %v2955_v29, 0.0 }
 0xa3e   : > { %v2676_v59 = vpop.permute.xlu1 %2675 }
 0xa3f   : > { %v2681_v4 = vsel %vm884_vm2, 0.0, %v2676_v59 }
 0xa40   : > { %3483 = vmatpush.msk.msrb.mxu2 %vm4508_vm0, %v2681_v4  ;;  %v2666_v6 = vpop.permute.xlu0 %2665 }
 0xa41   : > { %v2671_v7 = vsel %vm944_vm11, 0.0, %v2666_v6  ;;  %3484 = vmatmul.msk.f32.vlgmr.msrb.gmra.mxu2 %vm2684_vm8, %v3482_v2  ;;  %v3071_v36 = vpop.permute.xlu2 %3070 }
 0xa42   : > { %3487 = vmatpush.msk.msra.mxu0 %vm4513_vm10, %v2671_v7  ;;  %vm4523_vm10 = vmmov %vm4508_vm0 }
 0xa43   : > { %3488 = vmatmul.msk.f32.vlgmr.msra.gmra.mxu0 %vm2684_vm8, %v2672_v5 }
 0xa46   : > { %v2678_v8 = vpop.permute.xlu1 %2677 }
 0xa47   : > { %v2679_v21 = vsel %vm884_vm2, %v2676_v59, %v2678_v8  ;;  %vm4517_vm2 = vmmov %vm4508_vm0 }
 0xa48   : > { %3485 = vmatpush.msk.msrb.mxu3 %vm4514_vm13, %v2679_v21  ;;  %v3014_v12 = vpop.permute.xlu0 %3013  ;;  %vm4524_vm13 = vmmov %vm4508_vm0 }
 0xa49   : > { %3486 = vmatmul.msk.f32.vlgmr.msrb.gmra.mxu3 %vm2684_vm8, %v3482_v2  ;;  %v3015_v18 = vsel %vm1269_vm4, %v3012_v15, %v3014_v12  ;;  %v3017_v19 = vsel %vm1269_vm4, %v3014_v12, 0.0  ;;  %vm4522_vm4 = vmmov %vm4508_vm0 }
 0xa4e   : > { %v2784_v11 = vpop.permute.xlu1 %2783 }
 0xa4f   : > { %v2787_v13 = vsel %vm1054_vm15, %v2784_v11, %v2786_v10  ;;  %v2789_v14 = vsel %vm1054_vm15, 0.0, %v2784_v11  ;;  %vm4519_vm15 = vmmov %vm4508_vm0 }
 0xa50   : > { %3492 = vmatpush.msk.msra.mxu2 %vm4515_vm14, %v2789_v14  ;;  %3494 = vmatpush.msk.msra.mxu3 %vm4516_vm1, %v2787_v13  ;;  %v3130_v26 = vpop.permute.xlu0 %3129  ;;  %vm4526_vm14 = vmmov %vm4508_vm0 }
 0xa51   : > { %3493 = vmatmul.msk.f32.vlgmr.msra.gmra.mxu2 %vm2684_vm8, %v3491_v17  ;;  %3495 = vmatmul.msk.f32.vlgmr.msra.gmra.mxu3 %vm2684_vm8, %v3491_v17  ;;  %vm4531_vm1 = vmmov %vm4508_vm0 }
 0xa52   : > { %3502 = vmatpush.msk.msrb.mxu2 %vm4517_vm2, %v2657_v9  ;;  %3504 = vmatpush.msk.msrb.mxu3 %vm4518_vm9, %v2658_v62  ;;  %vm4532_vm2 = vmmov %vm4508_vm0 }
 0xa54   : > { %3512 = vmatpush.msk.msra.mxu2 %vm4519_vm15, %v3015_v18  ;;  %3514 = vmatpush.msk.msra.mxu3 %vm4520_vm6, %v3017_v19 }
 0xa56   : > { %v2668_v20 = vpop.permute.xlu1 %2667 }
 0xa57   : > { %v2669_v22 = vsel %vm944_vm11, %v2666_v6, %v2668_v20  ;;  %vm4521_vm11 = vmmov %vm4508_vm0 }
 0xa58   : > { %3489 = vmatpush.msk.msrb.mxu1 %vm4508_vm0, %v2669_v22  ;;  %v3073_v31 = vpop.permute.xlu0 %3072 }
 0xa59   : > { %3490 = vmatmul.msk.f32.vlgmr.msrb.gmra.mxu1 %vm2684_vm8, %v2672_v5  ;;  %3503 = vmatmul.msk.f32.vlgmr.msrb.gmra.mxu2 %vm2684_vm8, %v3501_v23  ;;  %v3076_v34 = vsel %vm896_vm7, %v3073_v31, 0.0  ;;  %v3074_v39 = vsel %vm896_vm7, %v3071_v36, %v3073_v31  ;;  %vm4527_vm7 = vmmov %vm4508_vm0 }
 0xa5a   : > { %3505 = vmatmul.msk.f32.vlgmr.msrb.gmra.mxu3 %vm2684_vm8, %v3501_v23 }
 0xa5e   : > { %v2843_v24 = vpop.permute.xlu1 %2842 }
 0xa5f   : > { %v2848_v27 = vsel %vm1110_vm12, 0.0, %v2843_v24 }
 0xa60   : > { %3497 = vmatpush.msk.msrb.mxu0 %vm4521_vm11, %v2848_v27 }
 0xa61   : > { %3498 = vmatmul.msk.f32.vlgmr.msrb.gmra.mxu0 %vm2684_vm8, %v3496_v25  ;;  %3513 = vmatmul.msk.f32.vlgmr.msra.gmra.mxu2 %vm2684_vm8, %v3511_v28 }
 0xa62   : > { %3515 = vmatmul.msk.f32.vlgmr.msra.gmra.mxu3 %vm2684_vm8, %v3511_v28 }
 0xa66   : > { %v2845_v30 = vpop.permute.xlu1 %2844 }
 0xa67   : > { %v2846_v32 = vsel %vm1110_vm12, %v2843_v24, %v2845_v30  ;;  %vm4525_vm12 = vmmov %vm4508_vm0 }
 0xa68   : > { %3499 = vmatpush.msk.msra.mxu1 %vm4522_vm4, %v2846_v32 }
 0xa69   : > { %3500 = vmatmul.msk.f32.vlgmr.msra.gmra.mxu1 %vm2684_vm8, %v3496_v25 }
 0xa6a   : > { %3509 = vmatpush.msk.msrb.mxu1 %vm4523_vm10, %v2958_v33 }
 0xa6c   : > { %3519 = vmatpush.msk.msra.mxu1 %vm4524_vm13, %v3076_v34 }
 0xa6e   : > { %v2953_v35 = vpop.permute.xlu1 %2952 }
 0xa6f   : > { %v2956_v37 = vsel %vm1213_vm3, %v2953_v35, %v2955_v29  ;;  %vm4528_vm3 = vmmov %vm4508_vm0 }
 0xa70   : > { %3507 = vmatpush.msk.msra.mxu0 %vm4525_vm12, %v2956_v37 }
 0xa71   : > { %3508 = vmatmul.msk.f32.vlgmr.msra.gmra.mxu0 %vm2684_vm8, %v3506_v38  ;;  %3510 = vmatmul.msk.f32.vlgmr.msrb.gmra.mxu1 %vm2684_vm8, %v3506_v38 }
 0xa72   : > { %3517 = vmatpush.msk.msrb.mxu0 %vm4526_vm14, %v3074_v39 }
 0xa76   : > { %v3132_v40 = vpop.permute.xlu1 %3131 }
 0xa77   : > { %v3133_v42 = vsel %vm1380_vm5, %v3130_v26, %v3132_v40  ;;  %v3135_v43 = vsel %vm1380_vm5, %v3132_v40, 0.0  ;;  %vm4529_vm5 = vmmov %vm4508_vm0 }
 0xa78   : > { %3522 = vmatpush.msk.msrb.mxu2 %vm4527_vm7, %v3133_v42  ;;  %3524 = vmatpush.msk.msrb.mxu3 %vm4528_vm3, %v3135_v43 }
 0xa79   : > { %3523 = vmatmul.msk.f32.vlgmr.msrb.gmra.mxu2 %vm2684_vm8, %v3521_v41  ;;  %3525 = vmatmul.msk.f32.vlgmr.msrb.gmra.mxu3 %vm2684_vm8, %v3521_v41 }
 0xa7a   : > { %3518 = vmatmul.msk.f32.vlgmr.msrb.gmra.mxu0 %vm2684_vm8, %v3516_v44  ;;  %3520 = vmatmul.msk.f32.vlgmr.msra.gmra.mxu1 %vm2684_vm8, %v3516_v44  ;;  %vm4530_vm8 = vmmov %vm4508_vm0 }
 0xac0   : > { %v2758_v47 = vpop.f32.mrf.mxu0 }
 0xac4   : > { %v2710_v45 = vpop.f32.mrf.mxu2 }
 0xac5   : > { %v2759_v61 = vadd.f32 %v2758_v47, %v2710_v45  ;;  %v3232_v45 = vld [vmem:[%s4439_s15] sm:$0xf] }
 0xacc   : > { %v2730_v46 = vpop.f32.mrf.mxu3 }
 0xad4   : > { %v2817_v0 = vpop.f32.mrf.mxu2  ;;  %v2837_v49 = vpop.f32.mrf.mxu3 }
 0xad5   : > { %v2840_v54 = vadd.f32 %v2817_v0, %v2759_v61 }
 0xad6   : > { %v2778_v48 = vpop.f32.mrf.mxu1 }
 0xad7   : > { %v2779_v52 = vadd.f32 %v2778_v48, %v2730_v46 }
 0xad9   : > { %v2841_v56 = vadd.f32 %v2837_v49, %v2779_v52  ;;  %v3235_v49 = vld [vmem:[%s4440_s16] sm:$0xf] }
 0xadc   : > { %v2927_v55 = vpop.f32.mrf.mxu2 }
 0xadd   : > { %v2947_v53 = vpop.f32.mrf.mxu3 }
 0xade   : > { %v2876_v50 = vpop.f32.mrf.mxu0 }
 0xadf   : > { %v2899_v57 = vadd.f32 %v2876_v50, %v2840_v54 }
 0xae1   : > { %v2950_v62 = vadd.f32 %v2927_v55, %v2899_v57 }
 0xae4   : > { %v3045_v1 = vpop.f32.mrf.mxu2 }
 0xae5   : > { %v3065_v16 = vpop.f32.mrf.mxu3 }
 0xae6   : > { %v2896_v51 = vpop.f32.mrf.mxu1 }
 0xae7   : > { %v2900_v58 = vadd.f32 %v2896_v51, %v2841_v56 }
 0xae9   : > { %v2951_v63 = vadd.f32 %v2947_v53, %v2900_v58 }
 0xaee   : > { %v2986_v60 = vpop.f32.mrf.mxu0  ;;  %v3006_v9 = vpop.f32.mrf.mxu1 }
 0xaef   : > { %v3009_v3 = vadd.f32 %v2986_v60, %v2950_v62  ;;  %v3010_v59 = vadd.f32 %v3006_v9, %v2951_v63 }
 0xaf1   : > { %v3068_v6 = vadd.f32 %v3045_v1, %v3009_v3  ;;  %v3069_v5 = vadd.f32 %v3065_v16, %v3010_v59 }
 0xaf7   : > { %v3104_v2 = vpop.f32.mrf.mxu0  ;;  %v3124_v4 = vpop.f32.mrf.mxu1 }
 0xaf8   : > { %v3127_v7 = vadd.f32 %v3104_v2, %v3068_v6  ;;  %v3128_v8 = vadd.f32 %v3124_v4, %v3069_v5 }
 0xafc   : > { %v3163_v10 = vpop.f32.mrf.mxu2  ;;  %v3183_v21 = vpop.f32.mrf.mxu3 }
 0xafd   : > { %v4368_v11 = vadd.f32 %v3163_v10, %v3127_v7  ;;  %v4370_v12 = vadd.f32 %v3183_v21, %v3128_v8 }
 0xaff   : > { %v3188_v13 = vsel %vm4529_vm5, %v4368_v11, 0.0  ;;  %v3189_v14 = vsel %vm4530_vm8, %v4370_v12, 0.0  ;;  %v3201_v17 = vmul.f32 %v4368_v11, %v4368_v11  ;;  %v3202_v15 = vmul.f32 %v4370_v12, %v4370_v12 }
 0xb00   : > { %v3190_v18 = vadd.f32 %v3189_v14, %v3188_v13 }
 0xb01   : > { %v3203_v19 = vsel %vm4531_vm1, %v3201_v17, 0.0  ;;  %v3204_v20 = vsel %vm4532_vm2, %v3202_v15, 0.0 }
 0xb02   : > { %3191 = vadd.xlane.f32.xlu1 %v3190_v18  ;;  %v3205_v22 = vadd.f32 %v3204_v20, %v3203_v19 }
 0xb04   : > { %3206 = vadd.xlane.f32.xlu2 %v3205_v22 }
 0xb75   : > { %v3192_v23 = vpop.xlane.xlu1 %3191 }
 0xb76   : > { %v3193_v26 = vrot.slane %v3192_v23, 4 }
 0xb77   : > { %v3207_v24 = vpop.xlane.xlu2 %3206 }
 0xb78   : > { %v3194_v25 = vadd.f32 %v3193_v26, %v3192_v23  ;;  %v3208_v27 = vrot.slane %v3207_v24, 4 }
 0xb7a   : > { %v3195_v28 = vrot.slane %v3194_v25, 2  ;;  %v3209_v29 = vadd.f32 %v3208_v27, %v3207_v24 }
 0xb7c   : > { %v3196_v30 = vadd.f32 %v3195_v28, %v3194_v25  ;;  %v3210_v31 = vrot.slane %v3209_v29, 2 }
 0xb7e   : > { %v3211_v32 = vadd.f32 %v3210_v31, %v3209_v29  ;;  %v3197_v33 = vrot.slane %v3196_v30, 1 }
 0xb80   : > { %v3198_v34 = vadd.f32 %v3197_v33, %v3196_v30  ;;  %v3212_v35 = vrot.slane %v3211_v32, 1 }
 0xb82   : > { %3552 = vpush %v3198_v34  ;;  %v3213_v36 = vadd.f32 %v3212_v35, %v3211_v32 }
 0xb84   : > { %3554 = vpush %v3213_v36 }
 0xbb3   : > { %s3553_s29 = spop %3552 }
 0xbb4   : > { %s3200_s18 = smul.f32 0.0009765625, %s3553_s29  ;;  %s3271_s29 = scalar_lea.hbm %s4441_s17, %s3533_s4 }
 0xbb5   : > { %s3555_s23 = spop %3554 }
 0xbb6   : > { %s3216_s21 = smul.f32 %s3200_s18, %s3200_s18  ;;  %v3236_v48 = vstv %s3200_s18 }
 0xbb7   : > { %s3215_s24 = smul.f32 0.0009765625, %s3555_s23  ;;  %s556_s23 = scalar_lea.vmem [#allocation2], %s3351_s20 }
 0xbb9   : > { %s3217_s2 = ssub.f32 %s3215_s24, %s3216_s21  ;;  %s3273_s21 = sshll.u32 %s556_s23, 4  ;;  %s3274_s21 = int_to_ptr.vmem [resolvable:$true] %s3273_s21 }
 0xbba   : > { %s3275_s24 = sshll.u32 %s3271_s29, 4  ;;  %s3276_s24 = int_to_ptr.hbm [resolvable:$true] %s3275_s24 }
 0xbbb   : > { %s3218_s26 = smax.f32 %s4512_s3, %s3217_s2  ;;  %s3651_s2 = sshra.s32 %s3276_s24, 4  ;;  %s3652_s2 = int_to_ptr.hbm [resolvable:$true] %s3651_s2 }
 0xbbc   : > { %s3219_s0 = sadd.f32 1e-05, %s3218_s26  ;;  %s3653_s26 = scalar_lea.hbm %s3652_s2, 8 }
 0xbbd   : > { %p3654_p11 = scmp.ne.s32.totalorder %s3652_s2, %s3653_s26  ;;  %p3658_p0 = scmp.lt.s32.totalorder %s3652_s2, %s4441_s17 }
 0xbbe   : > { %v3220_v37 = vstv %s3219_s0  ;;  %p3659_p1 = scmp.lt.s32.totalorder %s3657_s27, %s3653_s26 }
 0xbbf   : > { %3635 = vrsqrt.f32 %v3220_v37  ;;  %vm3227_vm15 = vweird.f32 %v3220_v37  ;;  %p3655_p12 = pnand %p3654_p11, %p3846_p5 }
 0xbc0   : > { %p3660_p2 = por %p3659_p1, %p3658_p0 }
 0xbc1   : > { %p3656_p13 = pneg %p3655_p12 }
 0xbc3   : > { %p3661_p3 = pnand %p3660_p2, %p3656_p13 }
 0xbc5   : > { %v3636_v38 = vpop.eup %3635 }
 0xbc6   : > { %v3222_v39 = vmul.f32 %v3636_v38, %v3220_v37  ;;  %vm3228_vm9 = vweird.f32 %v3636_v38 }
 0xbc7   : > { %vm3229_vm6 = vmor %vm3227_vm15, %vm3228_vm9 }
 0xbc8   : > { %v3223_v40 = vmul.f32 %v3636_v38, %v3222_v39 }
 0xbca   : > { %v3224_v41 = vmul.f32 0.5, %v3223_v40 }
 0xbcc   : > { %v3225_v42 = vsub.f32 1.5, %v3224_v41 }
 0xbce   : > { %v3226_v43 = vmul.f32 %v3636_v38, %v3225_v42 }
 0xbd0   : > { %v3230_v44 = vsel %vm3229_vm6, %v3636_v38, %v3226_v43 }
 0xbd1   : > { %3556 = vpush %v3230_v44 }
 0xc02   : > { %s3557_s3 = spop %3556 }
 0xc03   : > { %v3233_v46 = vstv %s3557_s3 }
 0xc04   : > { %v3234_v47 = vmul.f32 %v3233_v46, %v3232_v45 }
 0xc06   : > { %3241 = vperm.xlu0 %3616, %v3234_v47   ;;  %v3237_v0 = vmul.f32 %v3236_v48, %v3234_v47 }
 0xc08   : > { %v3238_v61 = vsub.f32 %v3235_v49, %v3237_v0 }
 0xc0e   : > { %3248 = vperm.xlu0 %3616, %v3238_v61  }
 0xc78   : > { %v3242_v50 = vpop.permute.xlu0 %3241 }
 0xc79   : > { %v3245_v51 = vmul.f32 %v3242_v50, %v4370_v12  ;;  %v3244_v53 = vmul.f32 %v3242_v50, %v4368_v11 }
 0xc80   : > { %v3249_v52 = vpop.permute.xlu0 %3248 }
 0xc81   : > { %v3252_v54 = vadd.f32 %v3249_v52, %v3245_v51  ;;  %v3251_v55 = vadd.f32 %v3249_v52, %v3244_v53 }
 0xc83   : > { %v3255_v56 = vrot.slane %v3252_v54, 4 }
 0xc85   : > { %v3256_v57 = vsel %vm4508_vm0, %v3251_v55, %v3255_v56 }
 0xc86   : > { %3258 = vst [vmem:[%s556_s23] sm:$0xff] %v3256_v57 }
 0xc87   : > { %3664 = shalt.err (!%p3661_p3)
}
 0xc88   : > { %3558 = dma.vmem_to_hbm [thread:$0]  (%p3846_p5), %s3274_s21, 128, %s3276_s24, %s3260_s28  }
 0xc89 PF: > { %s4534_s19 = sld [smem:[#allocation7_spill]] }
 0xc8a   : > { %s4535_s22 = sld [smem:[#allocation5_spill]] }
 0xc8f   : > { %p3564_p4 = scmp.ge.s32.totalorder %s4534_s19, 2 }
 0xc90   : > { %s3287_s4 = sand.u32 1, %s4535_s22  }
 0xc91   : > { %p3561_p7 = pnand %p3564_p4, %p3850_p6  ;;  %s3288_s5 = scalar_lea.sflag [#allocation3], %s3287_s4 }
 0xc93   : > { %p3562_p8 = pneg %p3561_p7 }
 0xc95   : > { %3682 = dma.done.wait (%p3562_p8), %s3288_s5, 128  }
 0xc96   : > { %3684 = vsyncadd (%p3562_p8), %s3288_s5, 4294967168  ;;  %s4537_s27 = sld [smem:[#allocation8_spill]]  ;;  %s4540_s24 = smov %s3691_s25 }
 0xc97   : > { %s4538_s6 = sld [smem:[#allocation6_spill]] }
 0xc98   : > { %s4539_s26 = sld [smem:[#allocation9_spill]] }
 0xc9c   : > { %p27_p9 = scmp.ge.s32.totalorder %s4537_s27, 4  }
 0xc9d   : > { %s4541_s25 = smov %s4538_s6 }
 0xc9e   :  { %29 = sbr.rel (!%p27_p9) target bundleno = 11 (0xb), region = 158 }
 0xca3   :  { %3294 = vsyncpa [#allocation3], 1 }
 0xca4   :  { %3296 = vsyncpa [#allocation3 + $0x1], 1 }

</bundles_post_ra>
